<compile_context>
chip_gen: v6e
topology: v6e:2x2x1
jax: 0.10.0
libtpu: 0.0.40
codegen_flags: <defaults>
</compile_context>

<pallas_src>
import math
import functools

import jax
import jax.numpy as jnp
from jax import lax
from jax.experimental import pallas as pl
from jax.experimental.pallas import tpu as pltpu


MASK_VALUE = -1e30  # large-negative instead of -inf (safe for tiled online softmax)


# ----------------------------- in-kernel math helpers -----------------------------

def _layernorm(x, gamma, beta, eps):
    mean = jnp.mean(x, axis=-1, keepdims=True)
    var = jnp.mean((x - mean) ** 2, axis=-1, keepdims=True)
    return (x - mean) * lax.rsqrt(var + eps) * gamma + beta


def _gelu_exact(x):
    # matches torch.nn.GELU() default (erf-based)
    return 0.5 * x * (1.0 + lax.erf(x * (1.0 / math.sqrt(2.0))))


# ----------------------------------- kernel ---------------------------------------

def attention_block_kernel(x_ref,
                           ln1_g_ref, ln1_b_ref,
                           wq_ref, bq_ref, wk_ref, bk_ref, wv_ref, bv_ref,
                           wc_ref, bc_ref, lnm_g_ref, lnm_b_ref,
                           ln2_g_ref, ln2_b_ref,
                           w1_ref, b1_ref, w2_ref, b2_ref,
                           o_ref,
                           k_scr, v_scr,
                           *, heads, tq, nq):
    T, E = x_ref.shape                      # full sequence resident (bf16)
    hs = E // heads
    qi = pl.program_id(1)
    q0 = pl.multiple_of(qi * tq, tq)

    # ---- once per batch element: project K/V for the whole sequence into scratch ----
    @pl.when(qi == 0)
    def _():
        x_all = x_ref[...].astype(jnp.float32)
        h_all = _layernorm(x_all, ln1_g_ref[...], ln1_b_ref[...], 1e-5).astype(jnp.bfloat16)
        k = (jnp.dot(h_all, wk_ref[...], preferred_element_type=jnp.float32)
             + bk_ref[...]).astype(jnp.bfloat16)
        v = (jnp.dot(h_all, wv_ref[...], preferred_element_type=jnp.float32)
             + bv_ref[...]).astype(jnp.bfloat16)
        for hh in range(heads):
            k_scr[:, hh, :, :] = k[:, hh * hs:(hh + 1) * hs].reshape(nq, tq, hs)
            v_scr[:, hh, :, :] = v[:, hh * hs:(hh + 1) * hs].reshape(nq, tq, hs)

    # ------------------------------- per query tile ---------------------------------
    x_q = x_ref[pl.ds(q0, tq), :].astype(jnp.float32)                 # (tq, E)
    h_q = _layernorm(x_q, ln1_g_ref[...], ln1_b_ref[...], 1e-5)       # residual inside MHA

    # Q projection; fold the 1/sqrt(T) scale into q (module scales by seq-len, not hs)
    q = (jnp.dot(h_q.astype(jnp.bfloat16), wq_ref[...],
                 preferred_element_type=jnp.float32) + bq_ref[...]) * (1.0 / math.sqrt(T))
    q_h = jnp.stack([q[:, hh * hs:(hh + 1) * hs] for hh in range(heads)],
                    axis=0).astype(jnp.bfloat16)                      # (heads, tq, hs)

    # -------- unmasked, fully-below-diagonal KV tiles: j in [0, qi) ------------------
    def kv_step(j, carry):
        m_prev, l_prev, acc_prev = carry
        k_t = k_scr[j]                                                # (heads, tq, hs)
        v_t = v_scr[j]
        s = jnp.einsum("hqd,hkd->hqk", q_h, k_t,
                       preferred_element_type=jnp.float32)            # (heads, tq, tq)
        m_new = jnp.maximum(m_prev, jnp.max(s, axis=-1, keepdims=True))
        alpha = jnp.exp(m_prev - m_new)
        p = jnp.exp(s - m_new)
        l_new = alpha * l_prev + jnp.sum(p, axis=-1, keepdims=True)
        acc_new = alpha * acc_prev + jnp.einsum(
            "hqk,hkd->hqd", p.astype(jnp.bfloat16), v_t,
            preferred_element_type=jnp.float32)
        return m_new, l_new, acc_new

    m0 = jnp.full((heads, tq, 1), MASK_VALUE, jnp.float32)
    l0 = jnp.zeros((heads, tq, 1), jnp.float32)
    a0 = jnp.zeros((heads, tq, hs), jnp.float32)
    m_i, l_i, acc = lax.fori_loop(0, qi, kv_step, (m0, l0, a0))

    # -------- diagonal KV tile (j == qi): static lower-triangular mask ---------------
    k_d = k_scr[qi]
    v_d = v_scr[qi]
    s = jnp.einsum("hqd,hkd->hqk", q_h, k_d, preferred_element_type=jnp.float32)
    tri = (lax.broadcasted_iota(jnp.int32, (tq, tq), 0)
           >= lax.broadcasted_iota(jnp.int32, (tq, tq), 1))
    s = jnp.where(tri, s, MASK_VALUE)
    m_new = jnp.maximum(m_i, jnp.max(s, axis=-1, keepdims=True))
    alpha = jnp.exp(m_i - m_new)
    p = jnp.exp(s - m_new)
    l_fin = alpha * l_i + jnp.sum(p, axis=-1, keepdims=True)
    acc = alpha * acc + jnp.einsum("hqk,hkd->hqd", p.astype(jnp.bfloat16), v_d,
                                   preferred_element_type=jnp.float32)

    # deferred softmax normalization via the EUP
    attn = acc * pl.reciprocal(l_fin, approx=True)                    # (heads, tq, hs)
    attn = jnp.concatenate([attn[hh] for hh in range(heads)], axis=-1)  # (tq, E)

    # c_proj(attn + residual) then MHA-internal LayerNorm (eps = 1e-6)
    mha = (jnp.dot((attn + h_q).astype(jnp.bfloat16), wc_ref[...],
                   preferred_element_type=jnp.float32) + bc_ref[...])
    mha = _layernorm(mha, lnm_g_ref[...], lnm_b_ref[...], 1e-6)
    x1 = x_q + mha

    # MLP branch (per-row, so it tiles trivially with the query tile)
    h2 = _layernorm(x1, ln2_g_ref[...], ln2_b_ref[...], 1e-5)
    m = (jnp.dot(h2.astype(jnp.bfloat16), w1_ref[...],
                 preferred_element_type=jnp.float32) + b1_ref[...])
    m = _gelu_exact(m)
    m = (jnp.dot(m.astype(jnp.bfloat16), w2_ref[...],
                 preferred_element_type=jnp.float32) + b2_ref[...])
    o_ref[...] = (x1 + m).astype(o_ref.dtype)


# --------------------------------- wrapper -----------------------------------------

PARAM_ORDER = ("ln1_g", "ln1_b",
               "wq", "bq", "wk", "bk", "wv", "bv",
               "wc", "bc", "lnm_g", "lnm_b",
               "ln2_g", "ln2_b",
               "w1", "b1", "w2", "b2")
MATRIX_KEYS = ("wq", "wk", "wv", "wc", "w1", "w2")


def _pick_query_tile(T):
    if T <= 128:
        return T
    for cand in (128, 64, 32, 16, 8):
        if T % cand == 0:
            return cand
    return T


def self_attention_block(x, params, heads):
    B, T, E = x.shape
    assert E % heads == 0
    hs = E // heads
    tq = _pick_query_tile(T)
    assert T % tq == 0
    nq = T // tq

    # bf16 at the boundary: activations + large weight matrices; LN params/biases stay f32.
    x_bf = x.astype(jnp.bfloat16)
    weights = []
    for name in PARAM_ORDER:
        w = params[name]
        if name in MATRIX_KEYS:
            w = w.astype(jnp.bfloat16)
        weights.append(w)

    in_specs = [pl.BlockSpec((None, T, E), lambda b, q: (b, 0, 0))]
    # constant-index weight blocks: fetched once, reused across the whole grid
    in_specs += [pl.BlockSpec(w.shape, lambda b, q: (0, 0)) for w in weights]
    out_specs = pl.BlockSpec((None, tq, E), lambda b, q: (b, q, 0))

    kernel = functools.partial(attention_block_kernel, heads=heads, tq=tq, nq=nq)

    return pl.pallas_call(
        kernel,
        out_shape=jax.ShapeDtypeStruct((B, T, E), jnp.float32),
        grid=(B, nq),
        in_specs=in_specs,
        out_specs=out_specs,
        scratch_shapes=[
            pltpu.VMEM((nq, heads, tq, hs), jnp.bfloat16),   # K, head-major, tile-indexed
            pltpu.VMEM((nq, heads, tq, hs), jnp.bfloat16),   # V
        ],
        compiler_params=pltpu.CompilerParams(
            dimension_semantics=("parallel", "arbitrary"),
            vmem_limit_bytes=64 * 1024 * 1024,
        ),
    )(x_bf, *weights)


# ------------------------------ pure-JAX reference ---------------------------------

def reference_block(x, params, heads):
    B, T, E = x.shape
    hs = E // heads
    p = params

    def ln(z, g, b, eps):
        mu = jnp.mean(z, -1, keepdims=True)
        var = jnp.mean((z - mu) ** 2, -1, keepdims=True)
        return (z - mu) / jnp.sqrt(var + eps) * g + b

    h = ln(x, p["ln1_g"][0], p["ln1_b"][0], 1e-5)
    q = h @ p["wq"] + p["bq"][0]
    k = h @ p["wk"] + p["bk"][0]
    v = h @ p["wv"] + p["bv"][0]
    q = q.reshape(B, T, heads, hs).transpose(0, 2, 1, 3)
    k = k.reshape(B, T, heads, hs).transpose(0, 2, 1, 3)
    v = v.reshape(B, T, heads, hs).transpose(0, 2, 1, 3)
    s = jnp.einsum("bhtd,bhsd->bhts", q, k) / math.sqrt(T)
    mask = jnp.tril(jnp.ones((T, T), bool))
    s = jnp.where(mask, s, -jnp.inf)
    a = jax.nn.softmax(s, axis=-1)
    o = jnp.einsum("bhts,bhsd->bhtd", a, v).transpose(0, 2, 1, 3).reshape(B, T, E)
    o = (o + h) @ p["wc"] + p["bc"][0]
    o = ln(o, p["lnm_g"][0], p["lnm_b"][0], 1e-6)
    x1 = x + o
    h2 = ln(x1, p["ln2_g"][0], p["ln2_b"][0], 1e-5)
    m = h2 @ p["w1"] + p["b1"][0]
    m = 0.5 * m * (1.0 + lax.erf(m / math.sqrt(2.0)))
    m = m @ p["w2"] + p["b2"][0]
    return x1 + m


# ----------------------------------- main -------------------------------------------

def init_params(key, emb):
    ks = jax.random.split(key, 16)
    n = lambda k, shape, s=0.02: s * jax.random.normal(k, shape, jnp.float32)
    return {
        # block LayerNorms (eps=1e-5)
        "ln1_g": 1.0 + n(ks[0], (1, emb), 0.1), "ln1_b": n(ks[1], (1, emb), 0.1),
        "ln2_g": 1.0 + n(ks[2], (1, emb), 0.1), "ln2_b": n(ks[3], (1, emb), 0.1),
        # attention projections (stored (in, out))
        "wq": n(ks[4], (emb, emb)), "bq": n(ks[5], (1, emb)),
        "wk": n(ks[6], (emb, emb)), "bk": n(ks[7], (1, emb)),
        "wv": n(ks[8], (emb, emb)), "bv": n(ks[9], (1, emb)),
        "wc": n(ks[10], (emb, emb)), "bc": n(ks[11], (1, emb)),
        # MHA internal LayerNorm (eps=1e-6)
        "lnm_g": 1.0 + n(ks[12], (1, emb), 0.1), "lnm_b": n(ks[13], (1, emb), 0.1),
        # MLP
        "w1": n(ks[14], (emb, 4 * emb)), "b1": n(ks[15], (1, 4 * emb)),
        "w2": n(ks[14], (4 * emb, emb)), "b2": n(ks[15], (1, emb)),
    }


def _rounded_for_ref(x, params):
    # reference sees the same bf16-rounded x / weight matrices the kernel consumes
    xr = x.astype(jnp.bfloat16).astype(jnp.float32)
    pr = {k: (v.astype(jnp.bfloat16).astype(jnp.float32) if k in MATRIX_KEYS else v)
          for k, v in params.items()}
    return xr, pr


def _run_case(B, T, EMB, HEADS, seed):
    key = jax.random.PRNGKey(seed)
    kx, kp = jax.random.split(key)
    x = jax.random.normal(kx, (B, T, EMB), jnp.float32)
    params = init_params(kp, EMB)

    out = jax.block_until_ready(self_attention_block(x, params, HEADS))

    xr, pr = _rounded_for_ref(x, params)
    ref = reference_block(xr, pr, HEADS)
    assert out.shape == (B, T, EMB)
    err = float(jnp.max(jnp.abs(out - ref)))
    assert jnp.allclose(out, ref, rtol=2e-2, atol=2e-2), f"mismatch (max abs err {err})"


if __name__ == "__main__":
    # primary small config (dropout = 0.0 -> identity)
    _run_case(B=2, T=8, EMB=32, HEADS=4, seed=0)
    # longer sequence: exercises the query-tile grid axis + flash KV streaming (nq > 1)
    _run_case(B=1, T=256, EMB=32, HEADS=4, seed=0)
    print("KERNEL_OK")
</pallas_src>

<mosaic_0001>
module attributes {stable_mosaic.version = 11 : i64} {
  func.func @attention_block_kernel(%arg0: i32, %arg1: i32, %arg2: memref<1x8x32xbf16, #tpu.memory_space<vmem>>, %arg3: memref<1x32xf32, #tpu.memory_space<vmem>>, %arg4: memref<1x32xf32, #tpu.memory_space<vmem>>, %arg5: memref<32x32xbf16, #tpu.memory_space<vmem>>, %arg6: memref<1x32xf32, #tpu.memory_space<vmem>>, %arg7: memref<32x32xbf16, #tpu.memory_space<vmem>>, %arg8: memref<1x32xf32, #tpu.memory_space<vmem>>, %arg9: memref<32x32xbf16, #tpu.memory_space<vmem>>, %arg10: memref<1x32xf32, #tpu.memory_space<vmem>>, %arg11: memref<32x32xbf16, #tpu.memory_space<vmem>>, %arg12: memref<1x32xf32, #tpu.memory_space<vmem>>, %arg13: memref<1x32xf32, #tpu.memory_space<vmem>>, %arg14: memref<1x32xf32, #tpu.memory_space<vmem>>, %arg15: memref<1x32xf32, #tpu.memory_space<vmem>>, %arg16: memref<1x32xf32, #tpu.memory_space<vmem>>, %arg17: memref<32x128xbf16, #tpu.memory_space<vmem>>, %arg18: memref<1x128xf32, #tpu.memory_space<vmem>>, %arg19: memref<128x32xbf16, #tpu.memory_space<vmem>>, %arg20: memref<1x32xf32, #tpu.memory_space<vmem>>, %arg21: memref<1x8x32xf32, #tpu.memory_space<vmem>>, %arg22: memref<1x4x8x8xbf16, #tpu.memory_space<vmem>>, %arg23: memref<1x4x8x8xbf16, #tpu.memory_space<vmem>>) attributes {dimension_semantics = [#tpu.dimension_semantics<parallel>, #tpu.dimension_semantics<arbitrary>], iteration_bounds = array<i64: 2, 1>, scalar_prefetch = 0 : i64, scratch_operands = 2 : i64, tpu.core_type = #tpu.core_type<tc>, window_params = [{transform_indices = @transform_0, window_bounds = array<i64: 1, 8, 32>}, {pipeline_mode = #tpu.pipeline_mode<synchronous>, transform_indices = @transform_1, window_bounds = array<i64: 1, 32>}, {pipeline_mode = #tpu.pipeline_mode<synchronous>, transform_indices = @transform_2, window_bounds = array<i64: 1, 32>}, {pipeline_mode = #tpu.pipeline_mode<synchronous>, transform_indices = @transform_3, window_bounds = array<i64: 32, 32>}, {pipeline_mode = #tpu.pipeline_mode<synchronous>, transform_indices = @transform_4, window_bounds = array<i64: 1, 32>}, {pipeline_mode = #tpu.pipeline_mode<synchronous>, transform_indices = @transform_5, window_bounds = array<i64: 32, 32>}, {pipeline_mode = #tpu.pipeline_mode<synchronous>, transform_indices = @transform_6, window_bounds = array<i64: 1, 32>}, {pipeline_mode = #tpu.pipeline_mode<synchronous>, transform_indices = @transform_7, window_bounds = array<i64: 32, 32>}, {pipeline_mode = #tpu.pipeline_mode<synchronous>, transform_indices = @transform_8, window_bounds = array<i64: 1, 32>}, {pipeline_mode = #tpu.pipeline_mode<synchronous>, transform_indices = @transform_9, window_bounds = array<i64: 32, 32>}, {pipeline_mode = #tpu.pipeline_mode<synchronous>, transform_indices = @transform_10, window_bounds = array<i64: 1, 32>}, {pipeline_mode = #tpu.pipeline_mode<synchronous>, transform_indices = @transform_11, window_bounds = array<i64: 1, 32>}, {pipeline_mode = #tpu.pipeline_mode<synchronous>, transform_indices = @transform_12, window_bounds = array<i64: 1, 32>}, {pipeline_mode = #tpu.pipeline_mode<synchronous>, transform_indices = @transform_13, window_bounds = array<i64: 1, 32>}, {pipeline_mode = #tpu.pipeline_mode<synchronous>, transform_indices = @transform_14, window_bounds = array<i64: 1, 32>}, {pipeline_mode = #tpu.pipeline_mode<synchronous>, transform_indices = @transform_15, window_bounds = array<i64: 32, 128>}, {pipeline_mode = #tpu.pipeline_mode<synchronous>, transform_indices = @transform_16, window_bounds = array<i64: 1, 128>}, {pipeline_mode = #tpu.pipeline_mode<synchronous>, transform_indices = @transform_17, window_bounds = array<i64: 128, 32>}, {pipeline_mode = #tpu.pipeline_mode<synchronous>, transform_indices = @transform_18, window_bounds = array<i64: 1, 32>}, {transform_indices = @transform_19, window_bounds = array<i64: 1, 8, 32>}]} {
    %c8_i32 = arith.constant 8 : i32
    %0 = arith.muli %arg1, %c8_i32 : i32
    %1 = tpu.assume_multiple %0, 8 : i32
    %c0_i32 = arith.constant 0 : i32
    %2 = arith.cmpi eq, %arg1, %c0_i32 : i32
    %3 = arith.extui %2 : i1 to i32
    %c0_i32_0 = arith.constant 0 : i32
    %4 = arith.cmpi ne, %3, %c0_i32_0 : i32
    scf.if %4 {
      %c0_70 = arith.constant 0 : index
      %c0_71 = arith.constant 0 : index
      %c0_72 = arith.constant 0 : index
      %180 = vector.load %arg2[%c0_70, %c0_71, %c0_72] : memref<1x8x32xbf16, #tpu.memory_space<vmem>>, vector<1x8x32xbf16>
      %181 = vector.shape_cast %180 : vector<1x8x32xbf16> to vector<8x32xbf16>
      %182 = arith.extf %181 : vector<8x32xbf16> to vector<8x32xf32>
      %c0_73 = arith.constant 0 : index
      %c0_74 = arith.constant 0 : index
      %183 = vector.load %arg3[%c0_73, %c0_74] : memref<1x32xf32, #tpu.memory_space<vmem>>, vector<1x32xf32>
      %c0_75 = arith.constant 0 : index
      %c0_76 = arith.constant 0 : index
      %184 = vector.load %arg4[%c0_75, %c0_76] : memref<1x32xf32, #tpu.memory_space<vmem>>, vector<1x32xf32>
      %cst_77 = arith.constant dense<0.000000e+00> : vector<8xf32>
      %185 = vector.multi_reduction <add>, %182, %cst_77 [1] : vector<8x32xf32> to vector<8xf32>
      %186 = vector.shape_cast %185 : vector<8xf32> to vector<8x1xf32>
      %cst_78 = arith.constant 3.200000e+01 : f32
      %187 = vector.broadcast %cst_78 : f32 to vector<8x1xf32>
      %188 = arith.divf %186, %187 : vector<8x1xf32>
      %189 = vector.broadcast %188 : vector<8x1xf32> to vector<8x32xf32>
      %190 = arith.subf %182, %189 : vector<8x32xf32>
      %191 = arith.mulf %190, %190 : vector<8x32xf32>
      %cst_79 = arith.constant dense<0.000000e+00> : vector<8xf32>
      %192 = vector.multi_reduction <add>, %191, %cst_79 [1] : vector<8x32xf32> to vector<8xf32>
      %193 = vector.shape_cast %192 : vector<8xf32> to vector<8x1xf32>
      %cst_80 = arith.constant 3.200000e+01 : f32
      %194 = vector.broadcast %cst_80 : f32 to vector<8x1xf32>
      %195 = arith.divf %193, %194 : vector<8x1xf32>
      %196 = vector.broadcast %188 : vector<8x1xf32> to vector<8x32xf32>
      %197 = arith.subf %182, %196 : vector<8x32xf32>
      %cst_81 = arith.constant 9.99999974E-6 : f32
      %198 = vector.broadcast %cst_81 : f32 to vector<8x1xf32>
      %199 = arith.addf %195, %198 : vector<8x1xf32>
      %200 = math.rsqrt %199 : vector<8x1xf32>
      %201 = vector.broadcast %200 : vector<8x1xf32> to vector<8x32xf32>
      %202 = arith.mulf %197, %201 : vector<8x32xf32>
      %203 = vector.broadcast %183 : vector<1x32xf32> to vector<8x32xf32>
      %204 = arith.mulf %202, %203 : vector<8x32xf32>
      %205 = vector.broadcast %184 : vector<1x32xf32> to vector<8x32xf32>
      %206 = arith.addf %204, %205 : vector<8x32xf32>
      %207 = arith.truncf %206 : vector<8x32xf32> to vector<8x32xbf16>
      %c0_82 = arith.constant 0 : index
      %c0_83 = arith.constant 0 : index
      %208 = vector.load %arg7[%c0_82, %c0_83] : memref<32x32xbf16, #tpu.memory_space<vmem>>, vector<32x32xbf16>
      %cst_84 = arith.constant dense<0.000000e+00> : vector<8x32xf32>
      %209 = tpu.matmul %207, %208, %cst_84 {dimension_numbers = #tpu.dot_dimension_numbers<[1], [0], [0], [1], [0, 0, 1, 1], [], []>} : vector<8x32xbf16>, vector<32x32xbf16>, vector<8x32xf32> -> vector<8x32xf32>
      %c0_85 = arith.constant 0 : index
      %c0_86 = arith.constant 0 : index
      %210 = vector.load %arg8[%c0_85, %c0_86] : memref<1x32xf32, #tpu.memory_space<vmem>>, vector<1x32xf32>
      %211 = vector.broadcast %210 : vector<1x32xf32> to vector<8x32xf32>
      %212 = arith.addf %209, %211 : vector<8x32xf32>
      %213 = arith.truncf %212 : vector<8x32xf32> to vector<8x32xbf16>
      %c0_87 = arith.constant 0 : index
      %c0_88 = arith.constant 0 : index
      %214 = vector.load %arg9[%c0_87, %c0_88] : memref<32x32xbf16, #tpu.memory_space<vmem>>, vector<32x32xbf16>
      %cst_89 = arith.constant dense<0.000000e+00> : vector<8x32xf32>
      %215 = tpu.matmul %207, %214, %cst_89 {dimension_numbers = #tpu.dot_dimension_numbers<[1], [0], [0], [1], [0, 0, 1, 1], [], []>} : vector<8x32xbf16>, vector<32x32xbf16>, vector<8x32xf32> -> vector<8x32xf32>
      %c0_90 = arith.constant 0 : index
      %c0_91 = arith.constant 0 : index
      %216 = vector.load %arg10[%c0_90, %c0_91] : memref<1x32xf32, #tpu.memory_space<vmem>>, vector<1x32xf32>
      %217 = vector.broadcast %216 : vector<1x32xf32> to vector<8x32xf32>
      %218 = arith.addf %215, %217 : vector<8x32xf32>
      %219 = arith.truncf %218 : vector<8x32xf32> to vector<8x32xbf16>
      %220 = vector.extract_strided_slice %213 {offsets = [0, 0], sizes = [8, 8], strides = [1, 1]} : vector<8x32xbf16> to vector<8x8xbf16>
      %221 = vector.shape_cast %220 : vector<8x8xbf16> to vector<1x8x8xbf16>
      %c0_92 = arith.constant 0 : index
      %c0_93 = arith.constant 0 : index
      %c0_94 = arith.constant 0 : index
      %c0_95 = arith.constant 0 : index
      %222 = vector.load %arg22[%c0_92, %c0_93, %c0_94, %c0_95] : memref<1x4x8x8xbf16, #tpu.memory_space<vmem>>, vector<1x1x8x8xbf16>
      %223 = vector.shape_cast %222 : vector<1x1x8x8xbf16> to vector<1x8x8xbf16>
      %224 = vector.shape_cast %221 : vector<1x8x8xbf16> to vector<1x1x8x8xbf16>
      tpu.vector_store %arg22[%c0_92, %c0_93, %c0_94, %c0_95], %224 {strides = array<i32>} : memref<1x4x8x8xbf16, #tpu.memory_space<vmem>>, vector<1x1x8x8xbf16>,
      %225 = vector.extract_strided_slice %219 {offsets = [0, 0], sizes = [8, 8], strides = [1, 1]} : vector<8x32xbf16> to vector<8x8xbf16>
      %226 = vector.shape_cast %225 : vector<8x8xbf16> to vector<1x8x8xbf16>
      %c0_96 = arith.constant 0 : index
      %c0_97 = arith.constant 0 : index
      %c0_98 = arith.constant 0 : index
      %c0_99 = arith.constant 0 : index
      %227 = vector.load %arg23[%c0_96, %c0_97, %c0_98, %c0_99] : memref<1x4x8x8xbf16, #tpu.memory_space<vmem>>, vector<1x1x8x8xbf16>
      %228 = vector.shape_cast %227 : vector<1x1x8x8xbf16> to vector<1x8x8xbf16>
      %229 = vector.shape_cast %226 : vector<1x8x8xbf16> to vector<1x1x8x8xbf16>
      tpu.vector_store %arg23[%c0_96, %c0_97, %c0_98, %c0_99], %229 {strides = array<i32>} : memref<1x4x8x8xbf16, #tpu.memory_space<vmem>>, vector<1x1x8x8xbf16>,
      %230 = vector.extract_strided_slice %213 {offsets = [0, 8], sizes = [8, 8], strides = [1, 1]} : vector<8x32xbf16> to vector<8x8xbf16>
      %231 = vector.shape_cast %230 : vector<8x8xbf16> to vector<1x8x8xbf16>
      %c0_100 = arith.constant 0 : index
      %c1 = arith.constant 1 : index
      %c0_101 = arith.constant 0 : index
      %c0_102 = arith.constant 0 : index
      %232 = vector.load %arg22[%c0_100, %c1, %c0_101, %c0_102] : memref<1x4x8x8xbf16, #tpu.memory_space<vmem>>, vector<1x1x8x8xbf16>
      %233 = vector.shape_cast %232 : vector<1x1x8x8xbf16> to vector<1x8x8xbf16>
      %234 = vector.shape_cast %231 : vector<1x8x8xbf16> to vector<1x1x8x8xbf16>
      tpu.vector_store %arg22[%c0_100, %c1, %c0_101, %c0_102], %234 {strides = array<i32>} : memref<1x4x8x8xbf16, #tpu.memory_space<vmem>>, vector<1x1x8x8xbf16>,
      %235 = vector.extract_strided_slice %219 {offsets = [0, 8], sizes = [8, 8], strides = [1, 1]} : vector<8x32xbf16> to vector<8x8xbf16>
      %236 = vector.shape_cast %235 : vector<8x8xbf16> to vector<1x8x8xbf16>
      %c0_103 = arith.constant 0 : index
      %c1_104 = arith.constant 1 : index
      %c0_105 = arith.constant 0 : index
      %c0_106 = arith.constant 0 : index
      %237 = vector.load %arg23[%c0_103, %c1_104, %c0_105, %c0_106] : memref<1x4x8x8xbf16, #tpu.memory_space<vmem>>, vector<1x1x8x8xbf16>
      %238 = vector.shape_cast %237 : vector<1x1x8x8xbf16> to vector<1x8x8xbf16>
      %239 = vector.shape_cast %236 : vector<1x8x8xbf16> to vector<1x1x8x8xbf16>
      tpu.vector_store %arg23[%c0_103, %c1_104, %c0_105, %c0_106], %239 {strides = array<i32>} : memref<1x4x8x8xbf16, #tpu.memory_space<vmem>>, vector<1x1x8x8xbf16>,
      %240 = vector.extract_strided_slice %213 {offsets = [0, 16], sizes = [8, 8], strides = [1, 1]} : vector<8x32xbf16> to vector<8x8xbf16>
      %241 = vector.shape_cast %240 : vector<8x8xbf16> to vector<1x8x8xbf16>
      %c0_107 = arith.constant 0 : index
      %c2 = arith.constant 2 : index
      %c0_108 = arith.constant 0 : index
      %c0_109 = arith.constant 0 : index
      %242 = vector.load %arg22[%c0_107, %c2, %c0_108, %c0_109] : memref<1x4x8x8xbf16, #tpu.memory_space<vmem>>, vector<1x1x8x8xbf16>
      %243 = vector.shape_cast %242 : vector<1x1x8x8xbf16> to vector<1x8x8xbf16>
      %244 = vector.shape_cast %241 : vector<1x8x8xbf16> to vector<1x1x8x8xbf16>
      tpu.vector_store %arg22[%c0_107, %c2, %c0_108, %c0_109], %244 {strides = array<i32>} : memref<1x4x8x8xbf16, #tpu.memory_space<vmem>>, vector<1x1x8x8xbf16>,
      %245 = vector.extract_strided_slice %219 {offsets = [0, 16], sizes = [8, 8], strides = [1, 1]} : vector<8x32xbf16> to vector<8x8xbf16>
      %246 = vector.shape_cast %245 : vector<8x8xbf16> to vector<1x8x8xbf16>
      %c0_110 = arith.constant 0 : index
      %c2_111 = arith.constant 2 : index
      %c0_112 = arith.constant 0 : index
      %c0_113 = arith.constant 0 : index
      %247 = vector.load %arg23[%c0_110, %c2_111, %c0_112, %c0_113] : memref<1x4x8x8xbf16, #tpu.memory_space<vmem>>, vector<1x1x8x8xbf16>
      %248 = vector.shape_cast %247 : vector<1x1x8x8xbf16> to vector<1x8x8xbf16>
      %249 = vector.shape_cast %246 : vector<1x8x8xbf16> to vector<1x1x8x8xbf16>
      tpu.vector_store %arg23[%c0_110, %c2_111, %c0_112, %c0_113], %249 {strides = array<i32>} : memref<1x4x8x8xbf16, #tpu.memory_space<vmem>>, vector<1x1x8x8xbf16>,
      %250 = vector.extract_strided_slice %213 {offsets = [0, 24], sizes = [8, 8], strides = [1, 1]} : vector<8x32xbf16> to vector<8x8xbf16>
      %251 = vector.shape_cast %250 : vector<8x8xbf16> to vector<1x8x8xbf16>
      %c0_114 = arith.constant 0 : index
      %c3 = arith.constant 3 : index
      %c0_115 = arith.constant 0 : index
      %c0_116 = arith.constant 0 : index
      %252 = vector.load %arg22[%c0_114, %c3, %c0_115, %c0_116] : memref<1x4x8x8xbf16, #tpu.memory_space<vmem>>, vector<1x1x8x8xbf16>
      %253 = vector.shape_cast %252 : vector<1x1x8x8xbf16> to vector<1x8x8xbf16>
      %254 = vector.shape_cast %251 : vector<1x8x8xbf16> to vector<1x1x8x8xbf16>
      tpu.vector_store %arg22[%c0_114, %c3, %c0_115, %c0_116], %254 {strides = array<i32>} : memref<1x4x8x8xbf16, #tpu.memory_space<vmem>>, vector<1x1x8x8xbf16>,
      %255 = vector.extract_strided_slice %219 {offsets = [0, 24], sizes = [8, 8], strides = [1, 1]} : vector<8x32xbf16> to vector<8x8xbf16>
      %256 = vector.shape_cast %255 : vector<8x8xbf16> to vector<1x8x8xbf16>
      %c0_117 = arith.constant 0 : index
      %c3_118 = arith.constant 3 : index
      %c0_119 = arith.constant 0 : index
      %c0_120 = arith.constant 0 : index
      %257 = vector.load %arg23[%c0_117, %c3_118, %c0_119, %c0_120] : memref<1x4x8x8xbf16, #tpu.memory_space<vmem>>, vector<1x1x8x8xbf16>
      %258 = vector.shape_cast %257 : vector<1x1x8x8xbf16> to vector<1x8x8xbf16>
      %259 = vector.shape_cast %256 : vector<1x8x8xbf16> to vector<1x1x8x8xbf16>
      tpu.vector_store %arg23[%c0_117, %c3_118, %c0_119, %c0_120], %259 {strides = array<i32>} : memref<1x4x8x8xbf16, #tpu.memory_space<vmem>>, vector<1x1x8x8xbf16>,
    } else {
    }
    %c0 = arith.constant 0 : index
    %5 = arith.index_cast %1 : i32 to index
    %c0_1 = arith.constant 0 : index
    %6 = vector.load %arg2[%c0, %5, %c0_1] : memref<1x8x32xbf16, #tpu.memory_space<vmem>>, vector<1x8x32xbf16>
    %7 = vector.shape_cast %6 : vector<1x8x32xbf16> to vector<8x32xbf16>
    %8 = arith.extf %7 : vector<8x32xbf16> to vector<8x32xf32>
    %c0_2 = arith.constant 0 : index
    %c0_3 = arith.constant 0 : index
    %9 = vector.load %arg3[%c0_2, %c0_3] : memref<1x32xf32, #tpu.memory_space<vmem>>, vector<1x32xf32>
    %c0_4 = arith.constant 0 : index
    %c0_5 = arith.constant 0 : index
    %10 = vector.load %arg4[%c0_4, %c0_5] : memref<1x32xf32, #tpu.memory_space<vmem>>, vector<1x32xf32>
    %cst = arith.constant dense<0.000000e+00> : vector<8xf32>
    %11 = vector.multi_reduction <add>, %8, %cst [1] : vector<8x32xf32> to vector<8xf32>
    %12 = vector.shape_cast %11 : vector<8xf32> to vector<8x1xf32>
    %cst_6 = arith.constant 3.200000e+01 : f32
    %13 = vector.broadcast %cst_6 : f32 to vector<8x1xf32>
    %14 = arith.divf %12, %13 : vector<8x1xf32>
    %15 = vector.broadcast %14 : vector<8x1xf32> to vector<8x32xf32>
    %16 = arith.subf %8, %15 : vector<8x32xf32>
    %17 = arith.mulf %16, %16 : vector<8x32xf32>
    %cst_7 = arith.constant dense<0.000000e+00> : vector<8xf32>
    %18 = vector.multi_reduction <add>, %17, %cst_7 [1] : vector<8x32xf32> to vector<8xf32>
    %19 = vector.shape_cast %18 : vector<8xf32> to vector<8x1xf32>
    %cst_8 = arith.constant 3.200000e+01 : f32
    %20 = vector.broadcast %cst_8 : f32 to vector<8x1xf32>
    %21 = arith.divf %19, %20 : vector<8x1xf32>
    %22 = vector.broadcast %14 : vector<8x1xf32> to vector<8x32xf32>
    %23 = arith.subf %8, %22 : vector<8x32xf32>
    %cst_9 = arith.constant 9.99999974E-6 : f32
    %24 = vector.broadcast %cst_9 : f32 to vector<8x1xf32>
    %25 = arith.addf %21, %24 : vector<8x1xf32>
    %26 = math.rsqrt %25 : vector<8x1xf32>
    %27 = vector.broadcast %26 : vector<8x1xf32> to vector<8x32xf32>
    %28 = arith.mulf %23, %27 : vector<8x32xf32>
    %29 = vector.broadcast %9 : vector<1x32xf32> to vector<8x32xf32>
    %30 = arith.mulf %28, %29 : vector<8x32xf32>
    %31 = vector.broadcast %10 : vector<1x32xf32> to vector<8x32xf32>
    %32 = arith.addf %30, %31 : vector<8x32xf32>
    %33 = arith.truncf %32 : vector<8x32xf32> to vector<8x32xbf16>
    %c0_10 = arith.constant 0 : index
    %c0_11 = arith.constant 0 : index
    %34 = vector.load %arg5[%c0_10, %c0_11] : memref<32x32xbf16, #tpu.memory_space<vmem>>, vector<32x32xbf16>
    %cst_12 = arith.constant dense<0.000000e+00> : vector<8x32xf32>
    %35 = tpu.matmul %33, %34, %cst_12 {dimension_numbers = #tpu.dot_dimension_numbers<[1], [0], [0], [1], [0, 0, 1, 1], [], []>} : vector<8x32xbf16>, vector<32x32xbf16>, vector<8x32xf32> -> vector<8x32xf32>
    %c0_13 = arith.constant 0 : index
    %c0_14 = arith.constant 0 : index
    %36 = vector.load %arg6[%c0_13, %c0_14] : memref<1x32xf32, #tpu.memory_space<vmem>>, vector<1x32xf32>
    %37 = vector.broadcast %36 : vector<1x32xf32> to vector<8x32xf32>
    %38 = arith.addf %35, %37 : vector<8x32xf32>
    %cst_15 = arith.constant 0.353553385 : f32
    %39 = vector.broadcast %cst_15 : f32 to vector<8x32xf32>
    %40 = arith.mulf %38, %39 : vector<8x32xf32>
    %41 = vector.extract_strided_slice %40 {offsets = [0, 0], sizes = [8, 8], strides = [1, 1]} : vector<8x32xf32> to vector<8x8xf32>
    %42 = vector.extract_strided_slice %40 {offsets = [0, 8], sizes = [8, 8], strides = [1, 1]} : vector<8x32xf32> to vector<8x8xf32>
    %43 = vector.extract_strided_slice %40 {offsets = [0, 16], sizes = [8, 8], strides = [1, 1]} : vector<8x32xf32> to vector<8x8xf32>
    %44 = vector.extract_strided_slice %40 {offsets = [0, 24], sizes = [8, 8], strides = [1, 1]} : vector<8x32xf32> to vector<8x8xf32>
    %45 = vector.shape_cast %41 : vector<8x8xf32> to vector<1x8x8xf32>
    %46 = vector.shape_cast %42 : vector<8x8xf32> to vector<1x8x8xf32>
    %47 = vector.shape_cast %43 : vector<8x8xf32> to vector<1x8x8xf32>
    %48 = vector.shape_cast %44 : vector<8x8xf32> to vector<1x8x8xf32>
    %49 = tpu.concatenate %45, %46, %47, %48 in 0 : vector<1x8x8xf32>, vector<1x8x8xf32>, vector<1x8x8xf32>, vector<1x8x8xf32> -> vector<4x8x8xf32>
    %50 = arith.truncf %49 : vector<4x8x8xf32> to vector<4x8x8xbf16>
    %cst_16 = arith.constant -1.000000e+30 : f32
    %51 = vector.broadcast %cst_16 : f32 to vector<4x8x1xf32>
    %cst_17 = arith.constant 0.000000e+00 : f32
    %52 = vector.broadcast %cst_17 : f32 to vector<4x8x1xf32>
    %cst_18 = arith.constant 0.000000e+00 : f32
    %53 = vector.broadcast %cst_18 : f32 to vector<4x8x8xf32>
    %c0_i32_19 = arith.constant 0 : i32
    %54 = arith.subi %arg1, %c0_i32_19 : i32
    %55 = arith.addi %c0_i32_19, %54 : i32
    %c1_i32 = arith.constant 1 : i32
    %56:3 = scf.for %arg24 = %c0_i32_19 to %55 step %c1_i32 iter_args(%arg25 = %51, %arg26 = %52, %arg27 = %53) -> (vector<4x8x1xf32>, vector<4x8x1xf32>, vector<4x8x8xf32>)  : i32 {
      %180 = arith.index_cast %arg24 : i32 to index
      %c0_70 = arith.constant 0 : index
      %c0_71 = arith.constant 0 : index
      %c0_72 = arith.constant 0 : index
      %181 = vector.load %arg22[%180, %c0_70, %c0_71, %c0_72] : memref<1x4x8x8xbf16, #tpu.memory_space<vmem>>, vector<1x4x8x8xbf16>
      %182 = vector.shape_cast %181 : vector<1x4x8x8xbf16> to vector<4x8x8xbf16>
      %183 = arith.index_cast %arg24 : i32 to index
      %c0_73 = arith.constant 0 : index
      %c0_74 = arith.constant 0 : index
      %c0_75 = arith.constant 0 : index
      %184 = vector.load %arg23[%183, %c0_73, %c0_74, %c0_75] : memref<1x4x8x8xbf16, #tpu.memory_space<vmem>>, vector<1x4x8x8xbf16>
      %185 = vector.shape_cast %184 : vector<1x4x8x8xbf16> to vector<4x8x8xbf16>
      "tpu.trace_start"() <{level = 10 : i32, message = "hqd,hkd->hqk"}> : () -> ()
      %cst_76 = arith.constant dense<0.000000e+00> : vector<4x8x8xf32>
      %186 = tpu.matmul %50, %182, %cst_76 {dimension_numbers = #tpu.dot_dimension_numbers<[2], [2], [1], [1], [0, 0, 0, 1, 1, 1], [0], [0]>} : vector<4x8x8xbf16>, vector<4x8x8xbf16>, vector<4x8x8xf32> -> vector<4x8x8xf32>
      "tpu.trace_stop"() : () -> ()
      %cst_77 = arith.constant dense<0xFF800000> : vector<4x8xf32>
      %187 = vector.multi_reduction <maximumf>, %186, %cst_77 [2] : vector<4x8x8xf32> to vector<4x8xf32>
      %188 = vector.shape_cast %187 : vector<4x8xf32> to vector<4x8x1xf32>
      %189 = arith.maximumf %arg25, %188 : vector<4x8x1xf32>
      %190 = arith.subf %arg25, %189 : vector<4x8x1xf32>
      %191 = math.exp %190 : vector<4x8x1xf32>
      %192 = vector.broadcast %189 : vector<4x8x1xf32> to vector<4x8x8xf32>
      %193 = arith.subf %186, %192 : vector<4x8x8xf32>
      %194 = math.exp %193 : vector<4x8x8xf32>
      %195 = arith.mulf %191, %arg26 : vector<4x8x1xf32>
      %cst_78 = arith.constant dense<0.000000e+00> : vector<4x8xf32>
      %196 = vector.multi_reduction <add>, %194, %cst_78 [2] : vector<4x8x8xf32> to vector<4x8xf32>
      %197 = vector.shape_cast %196 : vector<4x8xf32> to vector<4x8x1xf32>
      %198 = arith.addf %195, %197 : vector<4x8x1xf32>
      %199 = vector.broadcast %191 : vector<4x8x1xf32> to vector<4x8x8xf32>
      %200 = arith.mulf %199, %arg27 : vector<4x8x8xf32>
      %201 = arith.truncf %194 : vector<4x8x8xf32> to vector<4x8x8xbf16>
      "tpu.trace_start"() <{level = 10 : i32, message = "hqk,hkd->hqd"}> : () -> ()
      %cst_79 = arith.constant dense<0.000000e+00> : vector<4x8x8xf32>
      %202 = tpu.matmul %201, %185, %cst_79 {dimension_numbers = #tpu.dot_dimension_numbers<[2], [1], [1], [2], [0, 0, 0, 1, 1, 2], [0], [0]>} : vector<4x8x8xbf16>, vector<4x8x8xbf16>, vector<4x8x8xf32> -> vector<4x8x8xf32>
      "tpu.trace_stop"() : () -> ()
      %203 = arith.addf %200, %202 : vector<4x8x8xf32>
      scf.yield %189, %198, %203 : vector<4x8x1xf32>, vector<4x8x1xf32>, vector<4x8x8xf32>
    }
    %57 = arith.index_cast %arg1 : i32 to index
    %c0_20 = arith.constant 0 : index
    %c0_21 = arith.constant 0 : index
    %c0_22 = arith.constant 0 : index
    %58 = vector.load %arg22[%57, %c0_20, %c0_21, %c0_22] : memref<1x4x8x8xbf16, #tpu.memory_space<vmem>>, vector<1x4x8x8xbf16>
    %59 = vector.shape_cast %58 : vector<1x4x8x8xbf16> to vector<4x8x8xbf16>
    %60 = arith.index_cast %arg1 : i32 to index
    %c0_23 = arith.constant 0 : index
    %c0_24 = arith.constant 0 : index
    %c0_25 = arith.constant 0 : index
    %61 = vector.load %arg23[%60, %c0_23, %c0_24, %c0_25] : memref<1x4x8x8xbf16, #tpu.memory_space<vmem>>, vector<1x4x8x8xbf16>
    %62 = vector.shape_cast %61 : vector<1x4x8x8xbf16> to vector<4x8x8xbf16>
    "tpu.trace_start"() <{level = 10 : i32, message = "hqd,hkd->hqk"}> : () -> ()
    %cst_26 = arith.constant dense<0.000000e+00> : vector<4x8x8xf32>
    %63 = tpu.matmul %50, %59, %cst_26 {dimension_numbers = #tpu.dot_dimension_numbers<[2], [2], [1], [1], [0, 0, 0, 1, 1, 1], [0], [0]>} : vector<4x8x8xbf16>, vector<4x8x8xbf16>, vector<4x8x8xf32> -> vector<4x8x8xf32>
    "tpu.trace_stop"() : () -> ()
    %64 = tpu.iota {dimensions = array<i32: 0>} : vector<8x8xi32>
    %65 = tpu.iota {dimensions = array<i32: 1>} : vector<8x8xi32>
    %66 = arith.cmpi sge, %64, %65 : vector<8x8xi32>
    %cst_27 = arith.constant -1.000000e+30 : f32
    %67 = vector.shape_cast %66 : vector<8x8xi1> to vector<1x8x8xi1>
    %68 = vector.broadcast %67 : vector<1x8x8xi1> to vector<4x8x8xi1>
    %69 = vector.broadcast %cst_27 : f32 to vector<4x8x8xf32>
    %70 = arith.select %68, %63, %69 : vector<4x8x8xi1>, vector<4x8x8xf32>
    %cst_28 = arith.constant dense<0xFF800000> : vector<4x8xf32>
    %71 = vector.multi_reduction <maximumf>, %70, %cst_28 [2] : vector<4x8x8xf32> to vector<4x8xf32>
    %72 = vector.shape_cast %71 : vector<4x8xf32> to vector<4x8x1xf32>
    %73 = arith.maximumf %56#0, %72 : vector<4x8x1xf32>
    %74 = arith.subf %56#0, %73 : vector<4x8x1xf32>
    %75 = math.exp %74 : vector<4x8x1xf32>
    %76 = vector.broadcast %73 : vector<4x8x1xf32> to vector<4x8x8xf32>
    %77 = arith.subf %70, %76 : vector<4x8x8xf32>
    %78 = math.exp %77 : vector<4x8x8xf32>
    %79 = arith.mulf %75, %56#1 : vector<4x8x1xf32>
    %cst_29 = arith.constant dense<0.000000e+00> : vector<4x8xf32>
    %80 = vector.multi_reduction <add>, %78, %cst_29 [2] : vector<4x8x8xf32> to vector<4x8xf32>
    %81 = vector.shape_cast %80 : vector<4x8xf32> to vector<4x8x1xf32>
    %82 = arith.addf %79, %81 : vector<4x8x1xf32>
    %83 = vector.broadcast %75 : vector<4x8x1xf32> to vector<4x8x8xf32>
    %84 = arith.mulf %83, %56#2 : vector<4x8x8xf32>
    %85 = arith.truncf %78 : vector<4x8x8xf32> to vector<4x8x8xbf16>
    "tpu.trace_start"() <{level = 10 : i32, message = "hqk,hkd->hqd"}> : () -> ()
    %cst_30 = arith.constant dense<0.000000e+00> : vector<4x8x8xf32>
    %86 = tpu.matmul %85, %62, %cst_30 {dimension_numbers = #tpu.dot_dimension_numbers<[2], [1], [1], [2], [0, 0, 0, 1, 1, 2], [0], [0]>} : vector<4x8x8xbf16>, vector<4x8x8xbf16>, vector<4x8x8xf32> -> vector<4x8x8xf32>
    "tpu.trace_stop"() : () -> ()
    %87 = arith.addf %84, %86 : vector<4x8x8xf32>
    %88 = tpu.reciprocal %82 {approx = true} : vector<4x8x1xf32> -> vector<4x8x1xf32>
    %89 = vector.broadcast %88 : vector<4x8x1xf32> to vector<4x8x8xf32>
    %90 = arith.mulf %87, %89 : vector<4x8x8xf32>
    %91 = vector.extract_strided_slice %90 {offsets = [0, 0, 0], sizes = [1, 8, 8], strides = [1, 1, 1]} : vector<4x8x8xf32> to vector<1x8x8xf32>
    %92 = vector.shape_cast %91 : vector<1x8x8xf32> to vector<8x8xf32>
    %93 = vector.extract_strided_slice %90 {offsets = [1, 0, 0], sizes = [1, 8, 8], strides = [1, 1, 1]} : vector<4x8x8xf32> to vector<1x8x8xf32>
    %94 = vector.shape_cast %93 : vector<1x8x8xf32> to vector<8x8xf32>
    %95 = vector.extract_strided_slice %90 {offsets = [2, 0, 0], sizes = [1, 8, 8], strides = [1, 1, 1]} : vector<4x8x8xf32> to vector<1x8x8xf32>
    %96 = vector.shape_cast %95 : vector<1x8x8xf32> to vector<8x8xf32>
    %97 = vector.extract_strided_slice %90 {offsets = [3, 0, 0], sizes = [1, 8, 8], strides = [1, 1, 1]} : vector<4x8x8xf32> to vector<1x8x8xf32>
    %98 = vector.shape_cast %97 : vector<1x8x8xf32> to vector<8x8xf32>
    %99 = tpu.concatenate %92, %94, %96, %98 in 1 : vector<8x8xf32>, vector<8x8xf32>, vector<8x8xf32>, vector<8x8xf32> -> vector<8x32xf32>
    %100 = arith.addf %99, %32 : vector<8x32xf32>
    %101 = arith.truncf %100 : vector<8x32xf32> to vector<8x32xbf16>
    %c0_31 = arith.constant 0 : index
    %c0_32 = arith.constant 0 : index
    %102 = vector.load %arg11[%c0_31, %c0_32] : memref<32x32xbf16, #tpu.memory_space<vmem>>, vector<32x32xbf16>
    %cst_33 = arith.constant dense<0.000000e+00> : vector<8x32xf32>
    %103 = tpu.matmul %101, %102, %cst_33 {dimension_numbers = #tpu.dot_dimension_numbers<[1], [0], [0], [1], [0, 0, 1, 1], [], []>} : vector<8x32xbf16>, vector<32x32xbf16>, vector<8x32xf32> -> vector<8x32xf32>
    %c0_34 = arith.constant 0 : index
    %c0_35 = arith.constant 0 : index
    %104 = vector.load %arg12[%c0_34, %c0_35] : memref<1x32xf32, #tpu.memory_space<vmem>>, vector<1x32xf32>
    %105 = vector.broadcast %104 : vector<1x32xf32> to vector<8x32xf32>
    %106 = arith.addf %103, %105 : vector<8x32xf32>
    %c0_36 = arith.constant 0 : index
    %c0_37 = arith.constant 0 : index
    %107 = vector.load %arg13[%c0_36, %c0_37] : memref<1x32xf32, #tpu.memory_space<vmem>>, vector<1x32xf32>
    %c0_38 = arith.constant 0 : index
    %c0_39 = arith.constant 0 : index
    %108 = vector.load %arg14[%c0_38, %c0_39] : memref<1x32xf32, #tpu.memory_space<vmem>>, vector<1x32xf32>
    %cst_40 = arith.constant dense<0.000000e+00> : vector<8xf32>
    %109 = vector.multi_reduction <add>, %106, %cst_40 [1] : vector<8x32xf32> to vector<8xf32>
    %110 = vector.shape_cast %109 : vector<8xf32> to vector<8x1xf32>
    %cst_41 = arith.constant 3.200000e+01 : f32
    %111 = vector.broadcast %cst_41 : f32 to vector<8x1xf32>
    %112 = arith.divf %110, %111 : vector<8x1xf32>
    %113 = vector.broadcast %112 : vector<8x1xf32> to vector<8x32xf32>
    %114 = arith.subf %106, %113 : vector<8x32xf32>
    %115 = arith.mulf %114, %114 : vector<8x32xf32>
    %cst_42 = arith.constant dense<0.000000e+00> : vector<8xf32>
    %116 = vector.multi_reduction <add>, %115, %cst_42 [1] : vector<8x32xf32> to vector<8xf32>
    %117 = vector.shape_cast %116 : vector<8xf32> to vector<8x1xf32>
    %cst_43 = arith.constant 3.200000e+01 : f32
    %118 = vector.broadcast %cst_43 : f32 to vector<8x1xf32>
    %119 = arith.divf %117, %118 : vector<8x1xf32>
    %120 = vector.broadcast %112 : vector<8x1xf32> to vector<8x32xf32>
    %121 = arith.subf %106, %120 : vector<8x32xf32>
    %cst_44 = arith.constant 9.99999997E-7 : f32
    %122 = vector.broadcast %cst_44 : f32 to vector<8x1xf32>
    %123 = arith.addf %119, %122 : vector<8x1xf32>
    %124 = math.rsqrt %123 : vector<8x1xf32>
    %125 = vector.broadcast %124 : vector<8x1xf32> to vector<8x32xf32>
    %126 = arith.mulf %121, %125 : vector<8x32xf32>
    %127 = vector.broadcast %107 : vector<1x32xf32> to vector<8x32xf32>
    %128 = arith.mulf %126, %127 : vector<8x32xf32>
    %129 = vector.broadcast %108 : vector<1x32xf32> to vector<8x32xf32>
    %130 = arith.addf %128, %129 : vector<8x32xf32>
    %131 = arith.addf %8, %130 : vector<8x32xf32>
    %c0_45 = arith.constant 0 : index
    %c0_46 = arith.constant 0 : index
    %132 = vector.load %arg15[%c0_45, %c0_46] : memref<1x32xf32, #tpu.memory_space<vmem>>, vector<1x32xf32>
    %c0_47 = arith.constant 0 : index
    %c0_48 = arith.constant 0 : index
    %133 = vector.load %arg16[%c0_47, %c0_48] : memref<1x32xf32, #tpu.memory_space<vmem>>, vector<1x32xf32>
    %cst_49 = arith.constant dense<0.000000e+00> : vector<8xf32>
    %134 = vector.multi_reduction <add>, %131, %cst_49 [1] : vector<8x32xf32> to vector<8xf32>
    %135 = vector.shape_cast %134 : vector<8xf32> to vector<8x1xf32>
    %cst_50 = arith.constant 3.200000e+01 : f32
    %136 = vector.broadcast %cst_50 : f32 to vector<8x1xf32>
    %137 = arith.divf %135, %136 : vector<8x1xf32>
    %138 = vector.broadcast %137 : vector<8x1xf32> to vector<8x32xf32>
    %139 = arith.subf %131, %138 : vector<8x32xf32>
    %140 = arith.mulf %139, %139 : vector<8x32xf32>
    %cst_51 = arith.constant dense<0.000000e+00> : vector<8xf32>
    %141 = vector.multi_reduction <add>, %140, %cst_51 [1] : vector<8x32xf32> to vector<8xf32>
    %142 = vector.shape_cast %141 : vector<8xf32> to vector<8x1xf32>
    %cst_52 = arith.constant 3.200000e+01 : f32
    %143 = vector.broadcast %cst_52 : f32 to vector<8x1xf32>
    %144 = arith.divf %142, %143 : vector<8x1xf32>
    %145 = vector.broadcast %137 : vector<8x1xf32> to vector<8x32xf32>
    %146 = arith.subf %131, %145 : vector<8x32xf32>
    %cst_53 = arith.constant 9.99999974E-6 : f32
    %147 = vector.broadcast %cst_53 : f32 to vector<8x1xf32>
    %148 = arith.addf %144, %147 : vector<8x1xf32>
    %149 = math.rsqrt %148 : vector<8x1xf32>
    %150 = vector.broadcast %149 : vector<8x1xf32> to vector<8x32xf32>
    %151 = arith.mulf %146, %150 : vector<8x32xf32>
    %152 = vector.broadcast %132 : vector<1x32xf32> to vector<8x32xf32>
    %153 = arith.mulf %151, %152 : vector<8x32xf32>
    %154 = vector.broadcast %133 : vector<1x32xf32> to vector<8x32xf32>
    %155 = arith.addf %153, %154 : vector<8x32xf32>
    %156 = arith.truncf %155 : vector<8x32xf32> to vector<8x32xbf16>
    %c0_54 = arith.constant 0 : index
    %c0_55 = arith.constant 0 : index
    %157 = vector.load %arg17[%c0_54, %c0_55] : memref<32x128xbf16, #tpu.memory_space<vmem>>, vector<32x128xbf16>
    %cst_56 = arith.constant dense<0.000000e+00> : vector<8x128xf32>
    %158 = tpu.matmul %156, %157, %cst_56 {dimension_numbers = #tpu.dot_dimension_numbers<[1], [0], [0], [1], [0, 0, 1, 1], [], []>} : vector<8x32xbf16>, vector<32x128xbf16>, vector<8x128xf32> -> vector<8x128xf32>
    %c0_57 = arith.constant 0 : index
    %c0_58 = arith.constant 0 : index
    %159 = vector.load %arg18[%c0_57, %c0_58] : memref<1x128xf32, #tpu.memory_space<vmem>>, vector<1x128xf32>
    %160 = vector.broadcast %159 : vector<1x128xf32> to vector<8x128xf32>
    %161 = arith.addf %158, %160 : vector<8x128xf32>
    %cst_59 = arith.constant 5.000000e-01 : f32
    %162 = vector.broadcast %cst_59 : f32 to vector<8x128xf32>
    %163 = arith.mulf %162, %161 : vector<8x128xf32>
    %cst_60 = arith.constant 0.707106769 : f32
    %164 = vector.broadcast %cst_60 : f32 to vector<8x128xf32>
    %165 = arith.mulf %161, %164 : vector<8x128xf32>
    %166 = math.erf %165 : vector<8x128xf32>
    %cst_61 = arith.constant 1.000000e+00 : f32
    %167 = vector.broadcast %cst_61 : f32 to vector<8x128xf32>
    %168 = arith.addf %167, %166 : vector<8x128xf32>
    %169 = arith.mulf %163, %168 : vector<8x128xf32>
    %170 = arith.truncf %169 : vector<8x128xf32> to vector<8x128xbf16>
    %c0_62 = arith.constant 0 : index
    %c0_63 = arith.constant 0 : index
    %171 = vector.load %arg19[%c0_62, %c0_63] : memref<128x32xbf16, #tpu.memory_space<vmem>>, vector<128x32xbf16>
    %cst_64 = arith.constant dense<0.000000e+00> : vector<8x32xf32>
    %172 = tpu.matmul %170, %171, %cst_64 {dimension_numbers = #tpu.dot_dimension_numbers<[1], [0], [0], [1], [0, 0, 1, 1], [], []>} : vector<8x128xbf16>, vector<128x32xbf16>, vector<8x32xf32> -> vector<8x32xf32>
    %c0_65 = arith.constant 0 : index
    %c0_66 = arith.constant 0 : index
    %173 = vector.load %arg20[%c0_65, %c0_66] : memref<1x32xf32, #tpu.memory_space<vmem>>, vector<1x32xf32>
    %174 = vector.broadcast %173 : vector<1x32xf32> to vector<8x32xf32>
    %175 = arith.addf %172, %174 : vector<8x32xf32>
    %176 = arith.addf %131, %175 : vector<8x32xf32>
    %c0_67 = arith.constant 0 : index
    %c0_68 = arith.constant 0 : index
    %c0_69 = arith.constant 0 : index
    %177 = vector.load %arg21[%c0_67, %c0_68, %c0_69] : memref<1x8x32xf32, #tpu.memory_space<vmem>>, vector<1x8x32xf32>
    %178 = vector.shape_cast %177 : vector<1x8x32xf32> to vector<8x32xf32>
    %179 = vector.shape_cast %176 : vector<8x32xf32> to vector<1x8x32xf32>
    tpu.vector_store %arg21[%c0_67, %c0_68, %c0_69], %179 {strides = array<i32>} : memref<1x8x32xf32, #tpu.memory_space<vmem>>, vector<1x8x32xf32>,
    return
  }
  func.func @transform_0(%arg0: i32, %arg1: i32) -> (i32, i32, i32) {
    %c0_i32 = arith.constant 0 : i32
    %c0_i32_0 = arith.constant 0 : i32
    %c0_i32_1 = arith.constant 0 : i32
    return %arg0, %c0_i32, %c0_i32_0 : i32, i32, i32
  }
  func.func @transform_1(%arg0: i32, %arg1: i32) -> (i32, i32) {
    %c0_i32 = arith.constant 0 : i32
    %c0_i32_0 = arith.constant 0 : i32
    %c0_i32_1 = arith.constant 0 : i32
    return %c0_i32, %c0_i32_0 : i32, i32
  }
  func.func @transform_2(%arg0: i32, %arg1: i32) -> (i32, i32) {
    %c0_i32 = arith.constant 0 : i32
    %c0_i32_0 = arith.constant 0 : i32
    %c0_i32_1 = arith.constant 0 : i32
    return %c0_i32, %c0_i32_0 : i32, i32
  }
  func.func @transform_3(%arg0: i32, %arg1: i32) -> (i32, i32) {
    %c0_i32 = arith.constant 0 : i32
    %c0_i32_0 = arith.constant 0 : i32
    %c0_i32_1 = arith.constant 0 : i32
    return %c0_i32, %c0_i32_0 : i32, i32
  }
  func.func @transform_4(%arg0: i32, %arg1: i32) -> (i32, i32) {
    %c0_i32 = arith.constant 0 : i32
    %c0_i32_0 = arith.constant 0 : i32
    %c0_i32_1 = arith.constant 0 : i32
    return %c0_i32, %c0_i32_0 : i32, i32
  }
  func.func @transform_5(%arg0: i32, %arg1: i32) -> (i32, i32) {
    %c0_i32 = arith.constant 0 : i32
    %c0_i32_0 = arith.constant 0 : i32
    %c0_i32_1 = arith.constant 0 : i32
    return %c0_i32, %c0_i32_0 : i32, i32
  }
  func.func @transform_6(%arg0: i32, %arg1: i32) -> (i32, i32) {
    %c0_i32 = arith.constant 0 : i32
    %c0_i32_0 = arith.constant 0 : i32
    %c0_i32_1 = arith.constant 0 : i32
    return %c0_i32, %c0_i32_0 : i32, i32
  }
  func.func @transform_7(%arg0: i32, %arg1: i32) -> (i32, i32) {
    %c0_i32 = arith.constant 0 : i32
    %c0_i32_0 = arith.constant 0 : i32
    %c0_i32_1 = arith.constant 0 : i32
    return %c0_i32, %c0_i32_0 : i32, i32
  }
  func.func @transform_8(%arg0: i32, %arg1: i32) -> (i32, i32) {
    %c0_i32 = arith.constant 0 : i32
    %c0_i32_0 = arith.constant 0 : i32
    %c0_i32_1 = arith.constant 0 : i32
    return %c0_i32, %c0_i32_0 : i32, i32
  }
  func.func @transform_9(%arg0: i32, %arg1: i32) -> (i32, i32) {
    %c0_i32 = arith.constant 0 : i32
    %c0_i32_0 = arith.constant 0 : i32
    %c0_i32_1 = arith.constant 0 : i32
    return %c0_i32, %c0_i32_0 : i32, i32
  }
  func.func @transform_10(%arg0: i32, %arg1: i32) -> (i32, i32) {
    %c0_i32 = arith.constant 0 : i32
    %c0_i32_0 = arith.constant 0 : i32
    %c0_i32_1 = arith.constant 0 : i32
    return %c0_i32, %c0_i32_0 : i32, i32
  }
  func.func @transform_11(%arg0: i32, %arg1: i32) -> (i32, i32) {
    %c0_i32 = arith.constant 0 : i32
    %c0_i32_0 = arith.constant 0 : i32
    %c0_i32_1 = arith.constant 0 : i32
    return %c0_i32, %c0_i32_0 : i32, i32
  }
  func.func @transform_12(%arg0: i32, %arg1: i32) -> (i32, i32) {
    %c0_i32 = arith.constant 0 : i32
    %c0_i32_0 = arith.constant 0 : i32
    %c0_i32_1 = arith.constant 0 : i32
    return %c0_i32, %c0_i32_0 : i32, i32
  }
  func.func @transform_13(%arg0: i32, %arg1: i32) -> (i32, i32) {
    %c0_i32 = arith.constant 0 : i32
    %c0_i32_0 = arith.constant 0 : i32
    %c0_i32_1 = arith.constant 0 : i32
    return %c0_i32, %c0_i32_0 : i32, i32
  }
  func.func @transform_14(%arg0: i32, %arg1: i32) -> (i32, i32) {
    %c0_i32 = arith.constant 0 : i32
    %c0_i32_0 = arith.constant 0 : i32
    %c0_i32_1 = arith.constant 0 : i32
    return %c0_i32, %c0_i32_0 : i32, i32
  }
  func.func @transform_15(%arg0: i32, %arg1: i32) -> (i32, i32) {
    %c0_i32 = arith.constant 0 : i32
    %c0_i32_0 = arith.constant 0 : i32
    %c0_i32_1 = arith.constant 0 : i32
    return %c0_i32, %c0_i32_0 : i32, i32
  }
  func.func @transform_16(%arg0: i32, %arg1: i32) -> (i32, i32) {
    %c0_i32 = arith.constant 0 : i32
    %c0_i32_0 = arith.constant 0 : i32
    %c0_i32_1 = arith.constant 0 : i32
    return %c0_i32, %c0_i32_0 : i32, i32
  }
  func.func @transform_17(%arg0: i32, %arg1: i32) -> (i32, i32) {
    %c0_i32 = arith.constant 0 : i32
    %c0_i32_0 = arith.constant 0 : i32
    %c0_i32_1 = arith.constant 0 : i32
    return %c0_i32, %c0_i32_0 : i32, i32
  }
  func.func @transform_18(%arg0: i32, %arg1: i32) -> (i32, i32) {
    %c0_i32 = arith.constant 0 : i32
    %c0_i32_0 = arith.constant 0 : i32
    %c0_i32_1 = arith.constant 0 : i32
    return %c0_i32, %c0_i32_0 : i32, i32
  }
  func.func @transform_19(%arg0: i32, %arg1: i32) -> (i32, i32, i32) {
    %c0_i32 = arith.constant 0 : i32
    %c0_i32_0 = arith.constant 0 : i32
    return %arg0, %arg1, %c0_i32 : i32, i32, i32
  }
}

</mosaic_0001>

<bundles_post_ra>
// kernel: tpu_custom_call.1
= control target key start
LH: loop header
LB: loop body
LE: loop exit
PB: predicated region body
PF: predicated region fallthrough
CT: control target
= control target key end

     0   :  { %s3337_s0 = inlined_call_operand.hbm [shape: bf16[2,8,32], index: 0, kind: input, shape index: {}]   ;;  %s3338_s1 = inlined_call_operand.vmem [shape: f32[1,32], index: 1, kind: input, shape index: {}]   ;;  %s3339_s2 = inlined_call_operand.vmem [shape: f32[1,32], index: 2, kind: input, shape index: {}]   ;;  %s3340_s3 = inlined_call_operand.vmem [shape: bf16[32,32], index: 3, kind: input, shape index: {}]   ;;  %s3341_s4 = inlined_call_operand.vmem [shape: f32[1,32], index: 4, kind: input, shape index: {}]   ;;  %s3342_s5 = inlined_call_operand.vmem [shape: bf16[32,32], index: 5, kind: input, shape index: {}]   ;;  %s3343_s6 = inlined_call_operand.vmem [shape: f32[1,32], index: 6, kind: input, shape index: {}]   ;;  %s3344_s7 = inlined_call_operand.vmem [shape: bf16[32,32], index: 7, kind: input, shape index: {}]   ;;  %s3345_s8 = inlined_call_operand.vmem [shape: f32[1,32], index: 8, kind: input, shape index: {}]   ;;  %s3346_s9 = inlined_call_operand.vmem [shape: bf16[32,32], index: 9, kind: input, shape index: {}]   ;;  %s3347_s10 = inlined_call_operand.vmem [shape: f32[1,32], index: 10, kind: input, shape index: {}]   ;;  %s3348_s11 = inlined_call_operand.vmem [shape: f32[1,32], index: 11, kind: input, shape index: {}]   ;;  %s3349_s12 = inlined_call_operand.vmem [shape: f32[1,32], index: 12, kind: input, shape index: {}]   ;;  %s3350_s13 = inlined_call_operand.vmem [shape: f32[1,32], index: 13, kind: input, shape index: {}]   ;;  %s3351_s14 = inlined_call_operand.vmem [shape: f32[1,32], index: 14, kind: input, shape index: {}]   ;;  %s3352_s15 = inlined_call_operand.vmem [shape: bf16[32,128], index: 15, kind: input, shape index: {}]   ;;  %s3353_s16 = inlined_call_operand.vmem [shape: f32[1,128], index: 16, kind: input, shape index: {}]   ;;  %s3354_s17 = inlined_call_operand.vmem [shape: bf16[128,32], index: 17, kind: input, shape index: {}]   ;;  %s3355_s18 = inlined_call_operand.vmem [shape: f32[1,32], index: 18, kind: input, shape index: {}]   ;;  %s3356_s19 = inlined_call_operand.hbm [shape: f32[2,8,32], index: 19, kind: output, shape index: {}]  }
   0x1   :  { %3361 = sst [smem:[#allocation14_spill]] %s3337_s0 }
   0x2   :  { %3362 = sst [smem:[#allocation15_spill]] %s3338_s1 }
   0x3   :  { %3363 = sst [smem:[#allocation16_spill]] %s3339_s2 }
   0x4   :  { %3364 = sst [smem:[#allocation17_spill]] %s3340_s3 }
   0x5   :  { %3365 = sst [smem:[#allocation18_spill]] %s3350_s13 }
   0x6   :  { %3366 = sst [smem:[#allocation19_spill]] %s3351_s14 }
   0x7   :  { %3367 = sst [smem:[#allocation20_spill]] %s3353_s16 }
   0x8   :  { %3368 = sst [smem:[#allocation21_spill]] %s3355_s18 }
   0x9   :  { %3369 = sst [smem:[#allocation22_spill]] %s3356_s19 }
   0xa   :  { %24 = vsyncpa [#allocation5], 0 }
   0xb   :  { %26 = vsyncpa [#allocation5 + $0x1], 0 }
   0xc   :  { %27 = vsyncpa [#allocation6], 0 }
   0xd   :  { %29 = vsyncpa [#allocation6 + $0x1], 0  ;;  %s2948_s0 = smov 0   ;;  %s2950_s30 = smov 0  }
   0xe   :  { %s2952_s20 = smov 0   ;;  %s2954_s21 = smov 0  }
   0xf   :  { %s2956_s1 = smov 0   ;;  %s2958_s22 = smov 0  }
  0x10 LB: > { %3370 = sst [smem:[#allocation10_spill]] %s2816_s0  ;;  %s2383_s2 = sadd.s32 4294967295, %s2836_s22   ;;  %s2836_s22 = sphi %s2958_s22, %s35_s22   ;;  %s2832_s1 = sphi %s2956_s1, %s3398_s1   ;;  %s2828_s21 = sphi %s2954_s21, %s3397_s21   ;;  %s2824_s20 = sphi %s2952_s20, %s3396_s20   ;;  %s2820_s30 = sphi %s2950_s30, %s3395_s30   ;;  %s2816_s0 = sphi %s2948_s0, %s3394_s0  }
  0x11   : > { %3371 = sst [smem:[#allocation11_spill]] %s2828_s21  ;;  %s2384_s23 = sadd.s32 4294967294, %s2836_s22  }
  0x12   : > { %s47_s24 = sadd.s32 1, %s2832_s1  ;;  %s54_s25 = sadd.s32 1, %s2824_s20 }
  0x13   : > { %p49_p0 = scmp.ge.s32.totalorder %s47_s24, 2  ;;  %p61_p1 = scmp.ne.s32.totalorder %s2824_s20, %s2820_s30 }
  0x14   : > { %p62_p2 = scmp.eq.s32.totalorder %s2836_s22, 0  ;;  %p67_p3 = scmp.ne.s32.totalorder %s2820_s30, %s2816_s0 }
  0x15   : > { %s3400_s24 = smov (%p49_p0, %s47_s24), 0  ;;  %p68_p5 = scmp.eq.s32.totalorder %s2383_s2, 0 }
  0x16   : > { %3372 = sst [smem:[#allocation12_spill]] %s3400_s24  ;;  %p2989_p4 = por %p62_p2, %p61_p1 }
  0x17   : > { %s51_s26 = ssub.s32 %s2832_s1, %s3400_s24  ;;  %p471_p6 = scmp.eq.s32.totalorder %s2383_s2, 1 }
  0x18   : > { %p52_p7 = scmp.eq.s32.totalorder %s51_s26, 0  ;;  %p2995_p8 = por %p68_p5, %p67_p3 }
  0x19   : > { %p2999_p9 = por %p471_p6, %p61_p1  ;;  %p477_p10 = scmp.eq.s32.totalorder %s2384_s23, 1 }
  0x1a   : > { %s3004_s29 = scalar_select %p52_p7, %s2824_s20, %s54_s25  }
  0x1b   : > { %p3006_p11 = por %p477_p10, %p67_p3  ;;  %p2618_p13 = scmp.lt.s32.totalorder %s2836_s22, 2 }
  0x1c   : > { %3376 = sst [smem:[#allocation13_spill]] %s3004_s29  ;;  %s551_s2 = sand.u32 1, %s2824_s20  }
  0x1d   : > { %s3377_s0 = scalar_select %p3006_p11, 1, 0 }
  0x1e   : > { %s2387_s26 = sshll.u32 %s551_s2, 2  ;;  %s2388_s24 = sshll.u32 %s2832_s1, 6 }
  0x1f   : > { %s3378_s21 = sld [smem:[#allocation14_spill]]  ;;  %s555_s14 = scalar_lea.vmem [#allocation4], %s2387_s26 }
  0x20   : > { %s562_s13 = sshll.u32 %s555_s14, 4  ;;  %p3019_p0 = pnand %p2618_p13, %p2989_p4  ;;  %s563_s13 = int_to_ptr.vmem [resolvable:$true] %s562_s13 }
  0x21   : > { %p2389_p1 = scmp.ge.s32.totalorder %s2836_s22, 1  ;;  %p567_p2 = scmp.lt.s32.totalorder %s2836_s22, 3 }
  0x22   : > { %s552_s25 = scalar_lea.sflag [#allocation5], %s551_s2  ;;  %p2730_p3 = pneg %p3019_p0 }
  0x23   : > { %s2741_s29 = scalar_lea.vmem %s563_s13, 64  ;;  %s2838_s18 = smov [#allocation4]  }
  0x24   : > { %p2742_p5 = scmp.ne.s32.totalorder %s563_s13, %s2741_s29  ;;  %s2746_s19 = sshll.u32 %s2838_s18, 4  ;;  %s2747_s19 = int_to_ptr.vmem [resolvable:$false] %s2746_s19 }
  0x25   : > { %s560_s16 = scalar_lea.hbm %s3378_s21, %s2388_s24  ;;  %s2748_s14 = scalar_lea.vmem %s2747_s19, 128 }
  0x26   : > { %p2744_p6 = pnand %p2742_p5, %p2730_p3  ;;  %p2749_p10 = scmp.lt.s32.totalorder %s563_s13, %s2747_s19 }
  0x27   : > { %p2750_p12 = scmp.lt.s32.totalorder %s2748_s14, %s2741_s29 }
  0x28   : > { %p2745_p7 = pneg %p2744_p6 }
  0x29   : > { %p2751_p4 = por %p2750_p12, %p2749_p10 }
  0x2b   : > { %p2752_p13 = pnand %p2751_p4, %p2745_p7 }
  0x2d   : > { %2755 = shalt.err (!%p2752_p13)
}
  0x2e   : > { %2613 = dma.hbm_to_vmem [thread:$0]  (!%p3019_p0), %s560_s16, 64, %s563_s13, %s552_s25  }
  0x2f   : > { %p568_p11 = pnand %p2389_p1, %p567_p2 }
  0x30   : > { %s3034_s21 = sand.u32 (!%p568_p11), 1, %s2820_s30  }
  0x31   : > { %571 = sbr.rel (%p568_p11) target bundleno = 2623 (0xa3f), region = 96  ;;  %s2390_s24 = sshll.u32 (!%p568_p11), %s3034_s21, 2 }
  0x32   : > { %s574_s3 = scalar_lea.sflag (!%p568_p11), [#allocation5], %s3034_s21  ;;  %s577_s29 = scalar_lea.vmem (!%p568_p11), [#allocation4], %s2390_s24 }
  0x36   : > { %2807 = dma.done.wait (%p2995_p8), %s574_s3, 64  }
  0x37   : > { %2809 = vsyncadd (%p2995_p8), %s574_s3, 4294967232  ;;  %vm642_vm0 = vcmask 261120   ;;  %v638_v0 = vld [vmem:[%s577_s29] sm:$0xf]  ;;  %v2676_v16 = vld [vmem:[%s3342_s5 + $0x8] sm:$0xff]   ;;  %v2839_v17 = vmov 0.0  }
  0x38   : > { %v846_v1 = vld [vmem:[%s577_s29] sm:$0xf]  ;;  %v639_v2 = vunpack.c.l.bf16 %v638_v0  ;;  %2498 = vmatprep.subr.bf16.mxu0 %v2839_v17  ;;  %2522 = vmatprep.subr.bf16.mxu1 %v2839_v17  ;;  %vm2840_vm1 = vmmov 0   ;;  %s3380_s25 = sld [smem:[#allocation15_spill]]  ;;  %v2678_v31 = vld [vmem:[%s3344_s7 + $0x8] sm:$0xff]   ;;  %vm803_vm2 = vcmask 60416  }
  0x39   : > { %v3042_v3 = vunpack.c.l.bf16 %v846_v1  ;;  %2499 = vmatpush3.bf16.msra.mxu0 %v2676_v16  ;;  %v2677_v18 = vld [vmem:[%s3342_s5] sm:$0xff]   ;;  %2502 = vmatprep.mubr.msk.bf16.mxu0 %vm2840_vm1, %v2839_v17  ;;  %s3381_s14 = sld [smem:[#allocation16_spill]]  ;;  %s2841_s19 = smov 120   ;;  %vm1447_vm3 = vcmask 64512   ;;  %vm1714_vm4 = vcmask 1043456   ;;  %vm1921_vm6 = vcmask 130048  }
  0x3a   : > { %v643_v4 = vsel %vm642_vm0, %v639_v2, 0.0  ;;  %2500 = vmatprep.subr.bf16.mxu0 %v2839_v17  ;;  %2524 = vmatprep.mubr.msk.bf16.mxu1 %vm2840_vm1, %v2839_v17  ;;  %v2679_v34 = vld [vmem:[%s3344_s7] sm:$0xff]   ;;  %s3382_s2 = sld [smem:[#allocation17_spill]]  ;;  %s2843_s29 = smov 104   ;;  %vm1923_vm7 = vcmask 195584  }
  0x3b   : > { %v851_v5 = vsel %vm642_vm0, %v3042_v3, 0.0  ;;  %644 = vadd.xlane.f32.xlu0 %v643_v4  ;;  %v2394_v41 = vld [vmem:[%s3343_s6] ss:$0 sm:$0xff]  ;;  %s2844_s18 = smov 8   ;;  %s3383_s16 = sld [smem:[#allocation18_spill]] }
  0x3c   : > { %v2398_v48 = vld [vmem:[%s3345_s8] ss:$0 sm:$0xff]  ;;  %s3384_s23 = sld [smem:[#allocation19_spill]]  ;;  %s2391_s24 = sshll.u32 %s3034_s21, 3 }
  0x3d   : > { %2501 = vmatpush3.bf16.msra.mxu0 %v2677_v18  ;;  %v2406_v57 = vld [vmem:[%s3341_s4] ss:$0 sm:$0xff]  ;;  %s3387_s13 = sld [smem:[#allocation21_spill]]  ;;  %s631_s27 = scalar_lea.vmem [#allocation7], %s2391_s24 }
  0x3e   : > { %2506 = vmatprep.subr.bf16.mxu0 %v2839_v17  ;;  %v2392_v26 = vld [vmem:[%s3380_s25] ss:$0 sm:$0xff]  ;;  %s2253_s26 = sshll.u32 %s631_s27, 4  ;;  %s2847_s3 = smov [#allocation7]   ;;  %s3290_s26 = int_to_ptr.vmem [resolvable:$true] %s2253_s26 }
  0x3f   : > { %852 = vadd.xlane.f32.xlu0 %v851_v5  ;;  %v2393_v28 = vld [vmem:[%s3381_s14] ss:$0 sm:$0xff]  ;;  %s2842_s14 = smov 112   ;;  %s2756_s24 = scalar_lea.vmem %s3290_s26, 128 }
  0x40   : > { %v2680_v36 = vld [vmem:[%s3382_s2 + $0x8] sm:$0xff]   ;;  %v2681_v38 = vld [vmem:[%s3382_s2] sm:$0xff]   ;;  %p2757_p8 = scmp.ne.s32.totalorder %s3290_s26, %s2756_s24 }
  0x42   : > { %p2758_p11 = pnand %p2757_p8, %p2999_p9 }
  0x44   : > { %p2759_p12 = pneg %p2758_p11 }
  0xc4   : > { %v645_v6 = vpop.xlane.xlu0 %644 }
  0xc5   : > { %v647_v7 = vmul.f32 0.03125, %v645_v6 }
  0xc7   : > { %v648_v8 = vsub.f32 %v639_v2, %v647_v7 }
  0xc8   : > { %v853_v9 = vpop.xlane.xlu0 %852 }
  0xc9   : > { %v855_v10 = vmul.f32 0.03125, %v853_v9  ;;  %v649_v11 = vmul.f32 %v648_v8, %v648_v8 }
  0xcb   : > { %v856_v12 = vsub.f32 %v3042_v3, %v855_v10  ;;  %v650_v13 = vsel %vm642_vm0, %v649_v11, 0.0 }
  0xcc   : > { %651 = vadd.xlane.f32.xlu1 %v650_v13 }
  0xcd   : > { %v857_v14 = vmul.f32 %v856_v12, %v856_v12 }
  0xcf   : > { %v858_v15 = vsel %vm642_vm0, %v857_v14, 0.0 }
  0xd0   : > { %859 = vadd.xlane.f32.xlu1 %v858_v15 }
 0x155   : > { %v652_v19 = vpop.xlane.xlu1 %651 }
 0x156   : > { %v653_v20 = vmul.f32 0.03125, %v652_v19 }
 0x158   : > { %v654_v21 = vadd.f32 1e-05, %v653_v20  ;;  %v1632_v20 = vlaneseq }
 0x159   : > { %v860_v22 = vpop.xlane.xlu1 %859 }
 0x15a   : > { %2694 = vrsqrt.f32 %v654_v21  ;;  %v861_v23 = vmul.f32 0.03125, %v860_v22  ;;  %v1633_v21 = vshrl.u32 %v1632_v20, 7  ;;  %v1635_v22 = vand.u32 127, %v1632_v20 }
 0x15c   : > { %v862_v24 = vadd.f32 1e-05, %v861_v23  ;;  %vm1636_vm5 = vcmp.ge.s32.totalorder %v1633_v21, %v1635_v22 }
 0x15e   : > { %2696 = vrsqrt.f32 %v862_v24 }
 0x167   : > { %v2695_v25 = vpop.eup %2694 }
 0x168   : > { %v656_v27 = vmul.f32 %v2695_v25, %v648_v8 }
 0x16a   : > { %v663_v29 = vmul.f32 %v2392_v26, %v656_v27 }
 0x16b   : > { %v2697_v33 = vpop.eup %2696 }
 0x16c   : > { %v670_v30 = vadd.f32 %v2393_v28, %v663_v29  ;;  %v864_v35 = vmul.f32 %v2697_v33, %v856_v12 }
 0x16e   : > { %v671_v32 = vpack.c.bf16 %v670_v30, %v670_v30  ;;  %v871_v37 = vmul.f32 %v2392_v26, %v864_v35 }
 0x170   : > { %2503 = vmatmul.mubr.msk.bf16.vlgmr.msra.gmra.mxu0 %vm642_vm0, %v671_v32  ;;  %v3091_v39 = vadd.f32 %v2393_v28, %v871_v37 }
 0x171   : > { %2507 = vmatpush3.bf16.msra.mxu0 %v2678_v31  ;;  %2510 = vmatprep.mubr.msk.bf16.mxu0 %vm2840_vm1, %v2839_v17 }
 0x172   : > { %2508 = vmatprep.subr.bf16.mxu0 %v2839_v17  ;;  %v879_v40 = vpack.c.bf16 %v3091_v39, %v3091_v39 }
 0x175   : > { %2509 = vmatpush3.bf16.msra.mxu0 %v2679_v34 }
 0x176   : > { %2514 = vmatprep.subr.bf16.mxu0 %v2839_v17 }
 0x178   : > { %2511 = vmatmul.mubr.msk.bf16.vlgmr.msra.gmra.mxu0 %vm642_vm0, %v671_v32 }
 0x179   : > { %2515 = vmatpush3.bf16.msra.mxu0 %v2680_v36  ;;  %2518 = vmatprep.mubr.msk.bf16.mxu0 %vm2840_vm1, %v2839_v17 }
 0x17a   : > { %2516 = vmatprep.subr.bf16.mxu0 %v2839_v17 }
 0x17d   : > { %2517 = vmatpush3.bf16.msra.mxu0 %v2681_v38 }
 0x17e   : > { %2528 = vmatprep.subr.bf16.mxu0 %v2839_v17 }
 0x180   : > { %2519 = vmatmul.mubr.msk.bf16.vlgmr.msra.gmra.mxu0 %vm642_vm0, %v879_v40 }
 0x181   : > { %2530 = vmatprep.mubr.msk.bf16.mxu0 %vm2840_vm1, %v2839_v17 }
 0x230   : > { %v732_v42 = vpop.f32.mrf.mxu0 }
 0x231   : > { %v733_v43 = vadd.f32 %v2394_v41, %v732_v42 }
 0x232   : > { %v2504_v44 = vpop.f32.mrf.mxu0 }
 0x233   : > { %v738_v45 = vpack.c.bf16 %v733_v43, %v733_v43 }
 0x234   : > { %v735_v46 = vpop.f32.mrf.mxu0 }
 0x235   : > { %804 = vst.msk [vmem:[#allocation2] sm:$0xf] %vm803_vm2, %v738_v45  ;;  %809 = vrot.lane.b32.xlu0 %v738_v45, %s2841_s19  ;;  %822 = vrot.lane.b32.xlu1 %v738_v45, %s2842_s14 }
 0x236   : > { %v2505_v47 = vpop.f32.mrf.mxu0 }
 0x238   : > { %v796_v49 = vpop.f32.mrf.mxu0 }
 0x239   : > { %v797_v50 = vadd.f32 %v2398_v48, %v796_v49  ;;  %832 = vrot.lane.b32.xlu1 %v738_v45, %s2843_s29 }
 0x23a   : > { %v2512_v51 = vpop.f32.mrf.mxu0 }
 0x23b   : > { %v3109_v52 = vpack.c.bf16 %v797_v50, %v797_v50 }
 0x23c   : > { %v799_v53 = vpop.f32.mrf.mxu0  ;;  %v1437_v54 = vld [vmem:[#allocation2] sm:$0xf] }
 0x23d   : > { %805 = vst.msk [vmem:[#allocation3] sm:$0xf] %vm803_vm2, %v3109_v52  ;;  %v1452_v55 = vsel %vm1447_vm3, %v1437_v54, 0 }
 0x23e   : > { %v2513_v56 = vpop.f32.mrf.mxu0  ;;  %2523 = vmatpush3.bf16.xpose.msra.mxu1 %v1452_v55 }
 0x23f   : > { %2534 = vmatprep.subr.bf16.mxu1 %v2839_v17 }
 0x240   : > { %v940_v58 = vpop.f32.mrf.mxu0 }
 0x241   : > { %v941_v59 = vadd.f32 %v2406_v57, %v940_v58 }
 0x242   : > { %v2520_v60 = vpop.f32.mrf.mxu0 }
 0x243   : > { %v946_v61 = vmul.f32 0.35355338, %v941_v59 }
 0x244   : > { %v943_v62 = vpop.f32.mrf.mxu0  ;;  %v1443_v12 = vld [vmem:[#allocation3] sm:$0xf] }
 0x245   : > { %951 = vrot.lane.b32.xlu0 %v946_v61, %s2842_s14  ;;  %948 = vrot.lane.b32.xlu1 %v946_v61, %s2841_s19  ;;  %v957_v63 = vpack.c.bf16 %v946_v61, %v946_v61  ;;  %v1716_v16 = vsel %vm1714_vm4, %v1443_v12, 0 }
 0x246   : > { %v2521_v0 = vpop.f32.mrf.mxu0 }
 0x247   : > { %2525 = vmatmul.mubr.msk.bf16.vlgmr.msra.gmra.mxu1 %vm1447_vm3, %v957_v63 }
 0x248   : > { %2536 = vmatprep.mubr.msk.bf16.mxu1 %vm2840_vm1, %v2839_v17 }
 0x249   : > { %954 = vrot.lane.b32.xlu1 %v946_v61, %s2843_s29 }
 0x2a7   : > { %v823_v1 = vpop.permute.xlu1 %822  ;;  %v810_v2 = vpop.permute.xlu0 %809 }
 0x2a8   : > { %826 = vst.msk [vmem:[#allocation2 + $0x8] sm:$0xf] %vm803_vm2, %v823_v1  ;;  %813 = vst.msk [vmem:[#allocation2 + $0x4] sm:$0xf] %vm803_vm2, %v810_v2 }
 0x2ab   : > { %v833_v4 = vpop.permute.xlu1 %832 }
 0x2ac   : > { %836 = vst.msk [vmem:[#allocation2 + $0xc] sm:$0xf] %vm803_vm2, %v833_v4 }
 0x2af   : > { %v1438_v5 = vld [vmem:[#allocation2 + $0x4] sm:$0xf]  ;;  %v1439_v6 = vld [vmem:[#allocation2 + $0x8] sm:$0xf] }
 0x2b0   : > { %v1498_v7 = vsel %vm1447_vm3, %v1438_v5, 0  ;;  %v1544_v8 = vsel %vm1447_vm3, %v1439_v6, 0 }
 0x2b1   : > { %2529 = vmatpush3.bf16.xpose.msra.mxu0 %v1498_v7  ;;  %2535 = vmatpush3.bf16.xpose.msra.mxu1 %v1544_v8 }
 0x2b2   : > { %2540 = vmatprep.subr.bf16.mxu0 %v2839_v17  ;;  %2546 = vmatprep.subr.bf16.mxu1 %v2839_v17 }
 0x2b3   : > { %v1440_v11 = vld [vmem:[#allocation2 + $0xc] sm:$0xf] }
 0x2b4   : > { %v1590_v15 = vsel %vm1447_vm3, %v1440_v11, 0 }
 0x2b7   : > { %v949_v9 = vpop.permute.xlu1 %948  ;;  %v952_v10 = vpop.permute.xlu0 %951 }
 0x2b8   : > { %v958_v13 = vpack.c.bf16 %v949_v9, %v949_v9  ;;  %v959_v14 = vpack.c.bf16 %v952_v10, %v952_v10 }
 0x2ba   : > { %2531 = vmatmul.mubr.msk.bf16.vlgmr.msra.gmra.mxu0 %vm1447_vm3, %v958_v13  ;;  %2537 = vmatmul.mubr.msk.bf16.vlgmr.msra.gmra.mxu1 %vm1447_vm3, %v959_v14 }
 0x2bb   : > { %2541 = vmatpush3.bf16.xpose.msra.mxu0 %v1590_v15  ;;  %2547 = vmatpush3.bf16.msra.mxu1 %v1716_v16  ;;  %v955_v18 = vpop.permute.xlu1 %954 }
 0x2bc   : > { %2542 = vmatprep.mubr.msk.bf16.mxu0 %vm2840_vm1, %v2839_v17  ;;  %2548 = vmatprep.mubr.msk.bf16.mxu1 %vm2840_vm1, %v2839_v17  ;;  %v960_v19 = vpack.c.bf16 %v955_v18, %v955_v18 }
 0x2bd   : > { %2558 = vmatprep.subr.bf16.mxu1 %v2839_v17  ;;  %2552 = vmatprep.subr.bf16.mxu0 %v2839_v17 }
 0x2c2   : > { %2543 = vmatmul.mubr.msk.bf16.vlgmr.msra.gmra.mxu0 %vm1447_vm3, %v960_v19 }
 0x2c3   : > { %2554 = vmatprep.mubr.msk.bf16.mxu0 %vm2840_vm1, %v2839_v17 }
 0x307   : > { %v1488_v23 = vpop.f32.mrf.mxu1 }
 0x308   : > { %v1639_v24 = vsel %vm1636_vm5, %v1488_v23, -1e+30 }
 0x309   : > { %v2526_v25 = vpop.f32.mrf.mxu1  ;;  %v1643_v26 = vsel %vm1447_vm3, %v1639_v24, -inf }
 0x30a   : > { %1644 = vmax.xlane.f32.xlu0 %v1643_v26 }
 0x30b   : > { %v1491_v27 = vpop.f32.mrf.mxu1 }
 0x30d   : > { %v2527_v28 = vpop.f32.mrf.mxu1 }
 0x37a   : > { %v1534_v29 = vpop.f32.mrf.mxu0  ;;  %v1580_v30 = vpop.f32.mrf.mxu1 }
 0x37b   : > { %v1640_v31 = vsel %vm1636_vm5, %v1534_v29, -1e+30  ;;  %v1641_v32 = vsel %vm1636_vm5, %v1580_v30, -1e+30 }
 0x37c   : > { %v2532_v33 = vpop.f32.mrf.mxu0  ;;  %v2538_v34 = vpop.f32.mrf.mxu1  ;;  %v1646_v35 = vsel %vm1447_vm3, %v1640_v31, -inf  ;;  %v1649_v36 = vsel %vm1447_vm3, %v1641_v32, -inf }
 0x37d   : > { %1647 = vmax.xlane.f32.xlu1 %v1646_v35  ;;  %1650 = vmax.xlane.f32.xlu0 %v1649_v36 }
 0x37e   : > { %v1537_v37 = vpop.f32.mrf.mxu0  ;;  %v1583_v38 = vpop.f32.mrf.mxu1 }
 0x380   : > { %v2533_v40 = vpop.f32.mrf.mxu0  ;;  %v2539_v41 = vpop.f32.mrf.mxu1 }
 0x382   : > { %v1626_v42 = vpop.f32.mrf.mxu0 }
 0x383   : > { %v1642_v43 = vsel %vm1636_vm5, %v1626_v42, -1e+30 }
 0x384   : > { %v2544_v44 = vpop.f32.mrf.mxu0  ;;  %v1652_v45 = vsel %vm1447_vm3, %v1642_v43, -inf }
 0x385   : > { %1653 = vmax.xlane.f32.xlu0 %v1652_v45 }
 0x386   : > { %v1629_v46 = vpop.f32.mrf.mxu0 }
 0x388   : > { %v2545_v47 = vpop.f32.mrf.mxu0 }
 0x38e   : > { %827 = vrot.lane.b32.xlu1 %v3109_v52, %s2842_s14  ;;  %s2846_s14 = smov 24  }
 0x392   : > { %837 = vrot.lane.b32.xlu1 %v3109_v52, %s2843_s29  ;;  %s2760_s29 = sshll.u32 %s2847_s3, 4  ;;  %s2761_s29 = int_to_ptr.vmem [resolvable:$false] %s2760_s29 }
 0x393   : > { %v3156_v48 = vpop.xlane.xlu0 %1644  ;;  %p2763_p0 = scmp.lt.s32.totalorder %s3290_s26, %s2761_s29 }
 0x394   : > { %v1655_v49 = vmax.f32 %v3156_v48, -1e+30 }
 0x396   : > { %v1671_v50 = vsub.f32 %v1639_v24, %v1655_v49  ;;  %v1659_v23 = vsub.f32 -1e+30, %v1655_v49 }
 0x398   : > { %v1675_v51 = vmul.f32 1.442695, %v1671_v50  ;;  %v1663_v24 = vmul.f32 1.442695, %v1659_v23 }
 0x39a   : > { %2698 = vpow2.f32 %v1675_v51 }
 0x39b   : > { %817 = vrot.lane.b32.xlu0 %v3109_v52, %s2841_s19  ;;  %s2845_s19 = smov 16  }
 0x3a7   : > { %v2699_v53 = vpop.eup %2698 }
 0x3a8   : > { %v1707_v54 = vpack.c.bf16 %v2699_v53, %v2699_v53  ;;  %v1687_v22 = vsel %vm1447_vm3, %v2699_v53, 0.0 }
 0x3aa   : > { %2549 = vmatmul.mubr.msk.bf16.vlgmr.msra.gmra.mxu1 %vm1447_vm3, %v1707_v54 }
 0x3ab   : > { %2560 = vmatprep.mubr.msk.bf16.mxu1 %vm2840_vm1, %v2839_v17 }
 0x406   : > { %v3164_v55 = vpop.xlane.xlu1 %1647  ;;  %v3166_v56 = vpop.xlane.xlu0 %1650 }
 0x407   : > { %v1656_v57 = vmax.f32 %v3164_v55, -1e+30  ;;  %v1657_v58 = vmax.f32 %v3166_v56, -1e+30  ;;  %v2682_v55 = vld [vmem:[%s3346_s9 + $0x8] sm:$0xff]  }
 0x409   : > { %v1672_v59 = vsub.f32 %v1640_v31, %v1656_v57  ;;  %v1673_v52 = vsub.f32 %v1641_v32, %v1657_v58  ;;  %v1660_v36 = vsub.f32 -1e+30, %v1656_v57  ;;  %v1661_v37 = vsub.f32 -1e+30, %v1657_v58 }
 0x40a   : > { %v828_v60 = vpop.permute.xlu1 %827 }
 0x40b   : > { %v1677_v61 = vmul.f32 1.442695, %v1672_v59  ;;  %831 = vst.msk [vmem:[#allocation3 + $0x8] sm:$0xf] %vm803_vm2, %v828_v60  ;;  %v1679_v62 = vmul.f32 1.442695, %v1673_v52 }
 0x40c   : > { %v1665_v38 = vmul.f32 1.442695, %v1660_v36  ;;  %v1667_v40 = vmul.f32 1.442695, %v1661_v37 }
 0x40d   : > { %2700 = vpow2.f32 %v1677_v61 }
 0x40e   : > { %v838_v63 = vpop.permute.xlu1 %837  ;;  %v1654_v0 = vpop.xlane.xlu0 %1653  ;;  %2702 = vpow2.f32 %v1679_v62 }
 0x40f   : > { %841 = vst.msk [vmem:[#allocation3 + $0xc] sm:$0xf] %vm803_vm2, %v838_v63  ;;  %v1658_v1 = vmax.f32 %v1654_v0, -1e+30 }
 0x411   : > { %v1674_v2 = vsub.f32 %v1642_v43, %v1658_v1  ;;  %v1662_v41 = vsub.f32 -1e+30, %v1658_v1  ;;  %v2683_v1 = vld [vmem:[%s3346_s9] sm:$0xff]  }
 0x412   : > { %v818_v4 = vpop.permute.xlu0 %817  ;;  %v1445_v5 = vld [vmem:[#allocation3 + $0x8] sm:$0xf] }
 0x413   : > { %v1681_v6 = vmul.f32 1.442695, %v1674_v2  ;;  %821 = vst.msk [vmem:[#allocation3 + $0x4] sm:$0xf] %vm803_vm2, %v818_v4  ;;  %v1808_v7 = vsel %vm1714_vm4, %v1445_v5, 0 }
 0x414   : > { %2559 = vmatpush3.bf16.msra.mxu1 %v1808_v7  ;;  %v1669_v43 = vmul.f32 1.442695, %v1662_v41 }
 0x415   : > { %2570 = vmatprep.subr.bf16.mxu1 %v2839_v17  ;;  %2704 = vpow2.f32 %v1681_v6 }
 0x416   : > { %v1446_v12 = vld [vmem:[#allocation3 + $0xc] sm:$0xf]  ;;  %2706 = vpow2.f32 %v1663_v24  ;;  %v2429_v24 = vld [vmem:[%s3347_s10] ss:$0 sm:$0xff] }
 0x417   : > { %v1854_v18 = vsel %vm1714_vm4, %v1446_v12, 0 }
 0x41a   : > { %v1444_v8 = vld [vmem:[#allocation3 + $0x4] sm:$0xf]  ;;  %v2701_v9 = vpop.eup %2700 }
 0x41b   : > { %v1762_v10 = vsel %vm1714_vm4, %v1444_v8, 0  ;;  %v1690_v11 = vsel %vm1447_vm3, %v2701_v9, 0.0  ;;  %v2703_v13 = vpop.eup %2702  ;;  %v1708_v14 = vpack.c.bf16 %v2701_v9, %v2701_v9 }
 0x41c   : > { %2553 = vmatpush3.bf16.msra.mxu0 %v1762_v10  ;;  %1691 = vadd.xlane.f32.xlu1 %v1690_v11  ;;  %v1693_v15 = vsel %vm1447_vm3, %v2703_v13, 0.0  ;;  %v1709_v16 = vpack.c.bf16 %v2703_v13, %v2703_v13 }
 0x41d   : > { %2564 = vmatprep.subr.bf16.mxu0 %v2839_v17  ;;  %1694 = vadd.xlane.f32.xlu0 %v1693_v15 }
 0x41e   : > { %2561 = vmatmul.mubr.msk.bf16.vlgmr.msra.gmra.mxu1 %vm1447_vm3, %v1709_v16 }
 0x41f   : > { %2555 = vmatmul.mubr.msk.bf16.vlgmr.msra.gmra.mxu0 %vm1447_vm3, %v1708_v14  ;;  %2574 = vmatprep.mubr.msk.bf16.mxu1 %vm2840_vm1, %v2839_v17 }
 0x420   : > { %2565 = vmatpush3.bf16.msra.mxu0 %v1854_v18  ;;  %2566 = vmatprep.mubr.msk.bf16.mxu0 %vm2840_vm1, %v2839_v17 }
 0x421   : > { %2578 = vmatprep.subr.bf16.mxu0 %v2839_v17  ;;  %2571 = vmatpush3.bf16.msra.mxu1 %v2682_v55  ;;  %v2687_v55 = vld [vmem:[%s3354_s17 + $0x30] sm:$0xff]  }
 0x422   : > { %v2705_v19 = vpop.eup %2704  ;;  %2572 = vmatprep.subr.bf16.mxu1 %v2839_v17 }
 0x423   : > { %v1696_v20 = vsel %vm1447_vm3, %v2705_v19, 0.0  ;;  %v1710_v21 = vpack.c.bf16 %v2705_v19, %v2705_v19  ;;  %v2707_v25 = vpop.eup %2706 }
 0x424   : > { %1697 = vadd.xlane.f32.xlu0 %v1696_v20  ;;  %v1683_v26 = vmul.f32 0.0, %v2707_v25 }
 0x425   : > { %2573 = vmatpush3.bf16.msra.mxu1 %v2683_v1  ;;  %v2688_v1 = vld [vmem:[%s3354_s17 + $0x28] sm:$0xff]  }
 0x426   : > { %2586 = vmatprep.subr.bf16.mxu1 %v2839_v17 }
 0x427   : > { %2567 = vmatmul.mubr.msk.bf16.vlgmr.msra.gmra.mxu0 %vm1447_vm3, %v1710_v21 }
 0x428   : > { %2582 = vmatprep.mubr.msk.bf16.mxu0 %vm2840_vm1, %v2839_v17  ;;  %1688 = vadd.xlane.f32.xlu0 %v1687_v22 }
 0x46a   : > { %v1752_v27 = vpop.f32.mrf.mxu1 }
 0x46b   : > { %v1896_v28 = vadd.f32 %v1752_v27, %v1683_v26 }
 0x46c   : > { %v2550_v29 = vpop.f32.mrf.mxu1 }
 0x46e   : > { %v1755_v30 = vpop.f32.mrf.mxu1 }
 0x470   : > { %v2551_v31 = vpop.f32.mrf.mxu1 }
 0x4a5   : > { %v1692_v47 = vpop.xlane.xlu1 %1691 }
 0x4a6   : > { %v1695_v32 = vpop.xlane.xlu0 %1694 }
 0x4ad   : > { %v1698_v33 = vpop.xlane.xlu0 %1697 }
 0x4b1   : > { %v1689_v34 = vpop.xlane.xlu0 %1688 }
 0x4b2   : > { %v1699_v35 = vadd.f32 %v1689_v34, %v1683_v26 }
 0x4b4   : > { %2708 = vrcp.f32 %v1699_v35 }
 0x4b5   : > { %2710 = vpow2.f32 %v1665_v38 }
 0x4b6   : > { %2712 = vpow2.f32 %v1667_v40  ;;  %v2433_v40 = vld [vmem:[%s3348_s11] ss:$0 sm:$0xff] }
 0x4b7   : > { %2714 = vpow2.f32 %v1669_v43 }
 0x4c1   : > { %v2709_v42 = vpop.eup %2708 }
 0x4c2   : > { %v1904_v44 = vmul.f32 %v2709_v42, %v1896_v28  ;;  %v2711_v45 = vpop.eup %2710  ;;  %v2434_v42 = vld [vmem:[%s3349_s12] ss:$0 sm:$0xff] }
 0x4c3   : > { %v2713_v46 = vpop.eup %2712  ;;  %v1684_v48 = vmul.f32 0.0, %v2711_v45 }
 0x4c4   : > { %v1685_v49 = vmul.f32 0.0, %v2713_v46  ;;  %v2715_v53 = vpop.eup %2714 }
 0x4c5   : > { %v1700_v50 = vadd.f32 %v1692_v47, %v1684_v48  ;;  %v1686_v54 = vmul.f32 0.0, %v2715_v53  ;;  %v2684_v53 = vld [vmem:[%s3352_s15 + $0x8] sm:$0xff]  }
 0x4c6   : > { %v1701_v51 = vadd.f32 %v1695_v32, %v1685_v49  ;;  %2579 = vmatpush3.bf16.msra.mxu0 %v2684_v53 }
 0x4c7   : > { %2716 = vrcp.f32 %v1700_v50  ;;  %v1702_v56 = vadd.f32 %v1698_v33, %v1686_v54  ;;  %2580 = vmatprep.subr.bf16.mxu0 %v2839_v17 }
 0x4c8   : > { %2718 = vrcp.f32 %v1701_v51 }
 0x4c9   : > { %2720 = vrcp.f32 %v1702_v56 }
 0x4d4   : > { %v2717_v52 = vpop.eup %2716 }
 0x4d5   : > { %v2719_v62 = vpop.eup %2718 }
 0x4d6   : > { %v2721_v10 = vpop.eup %2720 }
 0x4de   : > { %v1844_v58 = vpop.f32.mrf.mxu1 }
 0x4df   : > { %v1798_v57 = vpop.f32.mrf.mxu0  ;;  %v1898_v60 = vadd.f32 %v1844_v58, %v1685_v49 }
 0x4e0   : > { %v1897_v59 = vadd.f32 %v1798_v57, %v1684_v48  ;;  %v2562_v0 = vpop.f32.mrf.mxu1 }
 0x4e1   : > { %v2556_v61 = vpop.f32.mrf.mxu0  ;;  %v1906_v2 = vmul.f32 %v2719_v62, %v1898_v60 }
 0x4e2   : > { %v1905_v63 = vmul.f32 %v2717_v52, %v1897_v59  ;;  %v1847_v5 = vpop.f32.mrf.mxu1  ;;  %v2435_v52 = vld [vmem:[%s3383_s16] ss:$0 sm:$0xff] }
 0x4e3   : > { %v1801_v4 = vpop.f32.mrf.mxu0  ;;  %1913 = vrot.lane.b32.xlu0 %v1906_v2, %s2845_s19  ;;  %v2436_v61 = vld [vmem:[%s3384_s23] ss:$0 sm:$0xff]  ;;  %v2691_v5 = vld [vmem:[%s3354_s17 + $0x10] sm:$0xff]   ;;  %s3385_s19 = sld [smem:[#allocation20_spill]] }
 0x4e4   : > { %1909 = vrot.lane.b32.xlu1 %v1905_v63, %s2844_s18  ;;  %v2563_v7 = vpop.f32.mrf.mxu1  ;;  %v2689_v2 = vld [vmem:[%s3354_s17 + $0x20] sm:$0xff]   ;;  %v2690_v4 = vld [vmem:[%s3354_s17 + $0x18] sm:$0xff]   ;;  %s3388_s18 = sld [smem:[#allocation22_spill]] }
 0x4e5   : > { %v2557_v6 = vpop.f32.mrf.mxu0  ;;  %v2693_v7 = vld [vmem:[%s3354_s17] sm:$0xff]  }
 0x4e6   : > { %v2692_v6 = vld [vmem:[%s3354_s17 + $0x8] sm:$0xff]  }
 0x4e7   : > { %v1890_v8 = vpop.f32.mrf.mxu0 }
 0x4e8   : > { %v1899_v9 = vadd.f32 %v1890_v8, %v1686_v54  ;;  %v2686_v54 = vld [vmem:[%s3354_s17 + $0x38] sm:$0xff]  }
 0x4e9   : > { %v2568_v11 = vpop.f32.mrf.mxu0  ;;  %v2437_v8 = vld [vmem:[%s3385_s19] ss:$0 sm:$0xff] }
 0x4ea   : > { %v1907_v12 = vmul.f32 %v2721_v10, %v1899_v9 }
 0x4eb   : > { %v1893_v13 = vpop.f32.mrf.mxu0 }
 0x4ec   : > { %1917 = vrot.lane.b32.xlu1 %v1907_v12, %s2846_s14  ;;  %s3386_s14 = sld [smem:[#allocation11_spill]] }
 0x4ed   : > { %v2569_v14 = vpop.f32.mrf.mxu0 }
 0x4f2   : > { %s2451_s16 = sshll.u32 %s3386_s14, 7  ;;  %s2239_s14 = scalar_lea.sflag [#allocation6], %s3034_s21 }
 0x4f3   : > { %s3288_s19 = scalar_lea.hbm %s3388_s18, %s2451_s16 }
 0x555   : > { %v1914_v18 = vpop.permute.xlu0 %1913 }
 0x556   : > { %v1910_v15 = vpop.permute.xlu1 %1909 }
 0x557   : > { %v1920_v16 = vsel %vm1447_vm3, %v1904_v44, %v1910_v15 }
 0x558   : > { %v1922_v20 = vsel %vm1921_vm6, %v1920_v16, %v1914_v18 }
 0x55e   : > { %v1918_v19 = vpop.permute.xlu1 %1917 }
 0x55f   : > { %v1924_v21 = vsel %vm1923_vm7, %v1922_v20, %v1918_v19  ;;  %v2441_v20 = vld [vmem:[%s3387_s13] ss:$0 sm:$0xff]  ;;  %s2762_s13 = scalar_lea.vmem %s2761_s29, 256 }
 0x560   : > { %v1925_v22 = vadd.f32 %v1924_v21, %v3091_v39  ;;  %p2764_p1 = scmp.lt.s32.totalorder %s2762_s13, %s2756_s24 }
 0x562   : > { %v1926_v23 = vpack.c.bf16 %v1925_v22, %v1925_v22  ;;  %p2765_p2 = por %p2764_p1, %p2763_p0 }
 0x564   : > { %2575 = vmatmul.mubr.msk.bf16.vlgmr.msra.gmra.mxu1 %vm642_vm0, %v1926_v23  ;;  %p2766_p3 = pnand %p2765_p2, %p2759_p12 }
 0x565   : > { %2602 = vmatprep.mubr.msk.bf16.mxu1 %vm2840_vm1, %v2839_v17  ;;  %2587 = vmatpush3.bf16.msra.mxu1 %v2686_v54 }
 0x566   : > { %2588 = vmatprep.subr.bf16.mxu1 %v2839_v17 }
 0x569   : > { %2589 = vmatpush3.bf16.msra.mxu1 %v2687_v55 }
 0x56a   : > { %2590 = vmatprep.subr.bf16.mxu1 %v2839_v17 }
 0x56d   : > { %2591 = vmatpush3.bf16.msra.mxu1 %v2688_v1 }
 0x56e   : > { %2592 = vmatprep.subr.bf16.mxu1 %v2839_v17 }
 0x571   : > { %2593 = vmatpush3.bf16.msra.mxu1 %v2689_v2 }
 0x572   : > { %2594 = vmatprep.subr.bf16.mxu1 %v2839_v17 }
 0x575   : > { %2595 = vmatpush3.bf16.msra.mxu1 %v2690_v4 }
 0x576   : > { %2596 = vmatprep.subr.bf16.mxu1 %v2839_v17 }
 0x579   : > { %2597 = vmatpush3.bf16.msra.mxu1 %v2691_v5 }
 0x57a   : > { %2598 = vmatprep.subr.bf16.mxu1 %v2839_v17 }
 0x57d   : > { %2599 = vmatpush3.bf16.msra.mxu1 %v2692_v6 }
 0x57e   : > { %2600 = vmatprep.subr.bf16.mxu1 %v2839_v17 }
 0x581   : > { %2601 = vmatpush3.bf16.msra.mxu1 %v2693_v7 }
 0x624   : > { %v1987_v25 = vpop.f32.mrf.mxu1 }
 0x625   : > { %v1988_v26 = vadd.f32 %v2429_v24, %v1987_v25 }
 0x626   : > { %v2576_v27 = vpop.f32.mrf.mxu1 }
 0x627   : > { %v1995_v28 = vsel %vm642_vm0, %v1988_v26, 0.0 }
 0x628   : > { %1996 = vadd.xlane.f32.xlu1 %v1995_v28  ;;  %v1990_v29 = vpop.f32.mrf.mxu1 }
 0x62a   : > { %v2577_v30 = vpop.f32.mrf.mxu1 }
 0x6b1   : > { %v1997_v31 = vpop.xlane.xlu1 %1996 }
 0x6b2   : > { %v1998_v39 = vmul.f32 0.03125, %v1997_v31 }
 0x6b4   : > { %v1999_v32 = vsub.f32 %v1988_v26, %v1998_v39 }
 0x6b6   : > { %v2000_v33 = vmul.f32 %v1999_v32, %v1999_v32 }
 0x6b8   : > { %v2001_v34 = vsel %vm642_vm0, %v2000_v33, 0.0 }
 0x6b9   : > { %2002 = vadd.xlane.f32.xlu0 %v2001_v34 }
 0x742   : > { %v2003_v35 = vpop.xlane.xlu0 %2002 }
 0x743   : > { %v2004_v36 = vmul.f32 0.03125, %v2003_v35 }
 0x745   : > { %v2005_v37 = vadd.f32 1e-06, %v2004_v36 }
 0x747   : > { %2722 = vrsqrt.f32 %v2005_v37 }
 0x754   : > { %v2723_v38 = vpop.eup %2722 }
 0x755   : > { %v2007_v41 = vmul.f32 %v2723_v38, %v1999_v32 }
 0x757   : > { %v2014_v43 = vmul.f32 %v2433_v40, %v2007_v41 }
 0x759   : > { %v2021_v44 = vadd.f32 %v2434_v42, %v2014_v43 }
 0x75b   : > { %v3225_v45 = vadd.f32 %v2021_v44, %v3042_v3  ;;  %v2685_v3 = vld [vmem:[%s3352_s15] sm:$0xff]  }
 0x75c   : > { %2581 = vmatpush3.bf16.msra.mxu0 %v2685_v3 }
 0x75d   : > { %v2025_v46 = vsel %vm642_vm0, %v3225_v45, 0.0 }
 0x75e   : > { %2026 = vadd.xlane.f32.xlu0 %v2025_v46 }
 0x7e7   : > { %v2027_v47 = vpop.xlane.xlu0 %2026 }
 0x7e8   : > { %v2028_v48 = vmul.f32 0.03125, %v2027_v47 }
 0x7ea   : > { %v2029_v49 = vsub.f32 %v3225_v45, %v2028_v48 }
 0x7ec   : > { %v2030_v50 = vmul.f32 %v2029_v49, %v2029_v49 }
 0x7ee   : > { %v2031_v51 = vsel %vm642_vm0, %v2030_v50, 0.0 }
 0x7ef   : > { %2032 = vadd.xlane.f32.xlu1 %v2031_v51 }
 0x878   : > { %v2033_v56 = vpop.xlane.xlu1 %2032 }
 0x879   : > { %v2034_v57 = vmul.f32 0.03125, %v2033_v56 }
 0x87b   : > { %v2035_v58 = vadd.f32 1e-05, %v2034_v57 }
 0x87d   : > { %2724 = vrsqrt.f32 %v2035_v58 }
 0x88a   : > { %v2725_v59 = vpop.eup %2724 }
 0x88b   : > { %v2037_v60 = vmul.f32 %v2725_v59, %v2029_v49 }
 0x88d   : > { %v2044_v62 = vmul.f32 %v2435_v52, %v2037_v60 }
 0x88f   : > { %v2051_v63 = vadd.f32 %v2436_v61, %v2044_v62 }
 0x891   : > { %v2052_v0 = vpack.c.bf16 %v2051_v63, %v2051_v63 }
 0x893   : > { %2583 = vmatmul.mubr.msk.bf16.vlgmr.msra.gmra.mxu0 %vm642_vm0, %v2052_v0 }
 0x953   : > { %v2113_v9 = vpop.f32.mrf.mxu0 }
 0x954   : > { %v2114_v10 = vadd.f32 %v2437_v8, %v2113_v9 }
 0x955   : > { %v2584_v11 = vpop.f32.mrf.mxu0 }
 0x956   : > { %v2120_v12 = vmul.f32 0.70710677, %v2114_v10  ;;  %v2119_v17 = vmul.f32 0.5, %v2114_v10 }
 0x957   : > { %v2116_v13 = vpop.f32.mrf.mxu0 }
 0x958   : > { %2726 = verf.f32 %v2120_v12 }
 0x959   : > { %v2585_v14 = vpop.f32.mrf.mxu0 }
 0x965   : > { %v2727_v15 = vpop.eup %2726 }
 0x966   : > { %v2122_v16 = vadd.f32 1.0, %v2727_v15 }
 0x968   : > { %v2123_v18 = vmul.f32 %v2122_v16, %v2119_v17 }
 0x96a   : > { %v2124_v19 = vpack.c.bf16 %v2123_v18, %v2123_v18 }
 0x96c   : > { %2603 = vmatmul.mubr.bf16.vlgmr.msra.gmra.mxu1 %v2124_v19 }
 0xa2c   : > { %v2230_v21 = vpop.f32.mrf.mxu1 }
 0xa2d   : > { %v2231_v22 = vadd.f32 %v2441_v20, %v2230_v21 }
 0xa2e   : > { %v2604_v23 = vpop.f32.mrf.mxu1 }
 0xa2f   : > { %v2236_v24 = vadd.f32 %v2231_v22, %v3225_v45 }
 0xa30   : > { %v2233_v25 = vpop.f32.mrf.mxu1 }
 0xa31   : > { %2237 = vst.msk [vmem:[%s631_s27] sm:$0xff] %vm642_vm0, %v2236_v24 }
 0xa32   : > { %v2605_v26 = vpop.f32.mrf.mxu1 }
 0xa33   : > { %2769 = shalt.err (!%p2766_p3)
}
 0xa34   : > { %s2770_s16 = scalar_lea.hbm %s3288_s19, 128  ;;  %s2774_s23 = scalar_lea.hbm %s3388_s18, 256 }
 0xa35   : > { %p2771_p5 = scmp.ne.s32.totalorder %s3288_s19, %s2770_s16  ;;  %p2775_p10 = scmp.lt.s32.totalorder %s3288_s19, %s3388_s18 }
 0xa36   : > { %p2776_p4 = scmp.lt.s32.totalorder %s2774_s23, %s2770_s16 }
 0xa37   : > { %p2772_p6 = pnand %p2771_p5, %p2999_p9 }
 0xa38   : > { %p2777_p13 = por %p2776_p4, %p2775_p10 }
 0xa39   : > { %p2773_p7 = pneg %p2772_p6 }
 0xa3b   : > { %p2778_p8 = pnand %p2777_p13, %p2773_p7 }
 0xa3d   : > { %2781 = shalt.err (!%p2778_p8)
}
 0xa3e   : > { %2608 = dma.vmem_to_hbm [thread:$0]  (%p2999_p9), %s3290_s26, 128, %s3288_s19, %s2239_s14  }
 0xa3f PF: > { %s3389_s24 = sld [smem:[#allocation10_spill]]  ;;  %p3390_p11 = scmp.ne.s32.totalorder %s3377_s0, 0 }
 0xa40   : > { %p3391_p12 = scmp.ge.s32.totalorder %s2836_s22, 2 }
 0xa42   : > { %p2615_p0 = pnand %p3391_p12, %p3390_p11 }
 0xa44   : > { %p2616_p1 = pneg %p2615_p0 }
 0xa45   : > { %s2265_s29 = sand.u32 1, %s3389_s24  }
 0xa46   : > { %s2266_s13 = scalar_lea.sflag [#allocation6], %s2265_s29 }
 0xa47   : > { %2811 = dma.done.wait (%p2616_p1), %s2266_s13, 128  }
 0xa48   : > { %2813 = vsyncadd (%p2616_p1), %s2266_s13, 4294967168  ;;  %s35_s22 = sadd.s32 1, %s2836_s22   ;;  %s3392_s28 = sld [smem:[#allocation13_spill]] }
 0xa49   : > { %p32_p2 = scmp.ge.s32.totalorder %s35_s22, 4   ;;  %s3393_s26 = sld [smem:[#allocation12_spill]] }
 0xa4a   : > { %s3394_s0 = smov %s2820_s30  ;;  %s3395_s30 = smov %s2824_s20 }
 0xa4b   : > { %s3397_s21 = smov %s2832_s1  ;;  %34 = sbr.rel (!%p32_p2) target bundleno = 16 (0x10), region = 174 }
 0xa4e   : > { %s3396_s20 = smov %s3392_s28 }
 0xa4f   : > { %s3398_s1 = smov %s3393_s26 }
 0xa50   :  { %2271 = vsyncpa [#allocation5], 1 }
 0xa51   :  { %2273 = vsyncpa [#allocation5 + $0x1], 1 }
 0xa52   :  { %2274 = vsyncpa [#allocation6], 1 }
 0xa53   :  { %2276 = vsyncpa [#allocation6 + $0x1], 1 }

</bundles_post_ra>
